<compile_context>
chip_gen: v7x
topology: tpu7x:2x2x1
jax: 0.10.0
libtpu: 0.0.40
codegen_flags: <defaults>
</compile_context>

<pallas_src>
import functools

import jax
import jax.numpy as jnp
from jax import lax
from jax.experimental import pallas as pl
from jax.experimental.pallas import tpu as pltpu


def _round_up(a, b):
    return (a + b - 1) // b * b


def _vmem_limit_bytes():
    # v5e/v6e: 128 MiB physical VMEM, v7x: 64 MiB. Leave headroom for double-buffering.
    cap = 128 * 1024 * 1024
    try:
        info = pltpu.get_tpu_info()
        cap = int(getattr(info, "vmem_capacity_bytes", cap))
    except Exception:
        pass
    return min(cap * 3 // 4, 100 * 1024 * 1024)


# ---------------------------------------------------------------------------
# One-time weight preparation (run OUTSIDE the step function).
# ---------------------------------------------------------------------------
def prepare_params(params, *, n_heads, heads_per_group=None):
    """Pre-pack weights (bf16, head-group-major, RoPE columns de-interleaved).

      wqkv  (D, 3D) -> (3*n_groups, D, gw)  [q groups | k groups | v groups]
      wproj (D, D)  -> (n_groups, gw, D)
      w1/w3 (D, H)  -> (D, Hp) zero-padded to Hp = round_up(H, 128)
      w2    (H, D)  -> (Hp, D) zero-padded rows
    """
    wqkv = jnp.asarray(params["wqkv"], jnp.float32)
    D = wqkv.shape[0]
    assert D % n_heads == 0
    hd = D // n_heads
    assert hd % 2 == 0, "head_dim must be even for rotary embeddings"

    if heads_per_group is None:
        # Group heads so each slab is ~256 lanes wide (full MXU result width on v6e/v7x).
        heads_per_group = max(1, min(n_heads, 256 // hd)) if hd < 256 else 1
    while n_heads % heads_per_group:
        heads_per_group -= 1
    hpg = heads_per_group
    n_groups = n_heads // hpg
    gw = hpg * hd

    w3d = wqkv.reshape(D, 3, n_heads, hd)

    def deinterleave(w):                      # per head: [d0 d1 d2 ...] -> [even | odd]
        return jnp.concatenate([w[..., 0::2], w[..., 1::2]], axis=-1)

    def group(w):                             # (D, n_heads, hd) -> (n_groups, D, gw)
        return jnp.transpose(w.reshape(D, n_groups, gw), (1, 0, 2))

    wq = group(deinterleave(w3d[:, 0]))
    wk = group(deinterleave(w3d[:, 1]))
    wv = group(w3d[:, 2])                     # v keeps original column order
    wqkv_g = jnp.concatenate([wq, wk, wv], axis=0).astype(jnp.bfloat16)

    wproj_g = jnp.asarray(params["wproj"], jnp.float32).reshape(
        n_groups, gw, D).astype(jnp.bfloat16)

    w1 = jnp.asarray(params["w1"], jnp.float32)
    w3 = jnp.asarray(params["w3"], jnp.float32)
    w2 = jnp.asarray(params["w2"], jnp.float32)
    H = w1.shape[1]
    Hp = _round_up(H, 128)
    # Zero-padding the hidden dim is exact: silu(0)*0 == 0 and zero fc2 rows add nothing.
    w1p = jnp.pad(w1, ((0, 0), (0, Hp - H))).astype(jnp.bfloat16)
    w3p = jnp.pad(w3, ((0, 0), (0, Hp - H))).astype(jnp.bfloat16)
    w2p = jnp.pad(w2, ((0, Hp - H), (0, 0))).astype(jnp.bfloat16)

    return dict(
        wqkv_g=wqkv_g, wproj_g=wproj_g, w1p=w1p, w3p=w3p, w2p=w2p,
        attn_norm_w=jnp.asarray(params["attn_norm_w"], jnp.float32).reshape(1, D),
        ffn_norm_w=jnp.asarray(params["ffn_norm_w"], jnp.float32).reshape(1, D),
    )


# ---------------------------------------------------------------------------
# Kernel 1: fused RMSNorm + QKV projection, streamed head-group weight slabs.
# ---------------------------------------------------------------------------
def _norm_qkv_kernel(x_ref, g_ref, w_ref, o_ref, xn_ref, *, eps):
    @pl.when(pl.program_id(1) == 0)
    def _():
        x = x_ref[...].astype(jnp.float32)
        ms = jnp.mean(x * x, axis=-1, keepdims=True)
        xn_ref[...] = (x * lax.rsqrt(ms + eps) * g_ref[...]).astype(xn_ref.dtype)

    o_ref[0] = jnp.dot(xn_ref[...], w_ref[0],
                       preferred_element_type=jnp.float32).astype(o_ref.dtype)


def _norm_qkv(x2d, gamma, wqkv_g, *, eps, tm, vmem_limit):
    Mp, D = x2d.shape
    n_slabs, _, gw = wqkv_g.shape
    return pl.pallas_call(
        functools.partial(_norm_qkv_kernel, eps=eps),
        out_shape=jax.ShapeDtypeStruct((n_slabs, Mp, gw), jnp.bfloat16),
        grid_spec=pltpu.PrefetchScalarGridSpec(
            num_scalar_prefetch=0,
            grid=(Mp // tm, n_slabs),
            in_specs=[
                pl.BlockSpec((tm, D), lambda i, j: (i, 0)),        # x rows (resident per i)
                pl.BlockSpec((1, D), lambda i, j: (0, 0)),         # attention_norm weight
                pl.BlockSpec((1, D, gw), lambda i, j: (j, 0, 0)),  # streamed weight slab
            ],
            out_specs=pl.BlockSpec((1, tm, gw), lambda i, j: (j, i, 0)),
            scratch_shapes=[pltpu.VMEM((tm, D), jnp.bfloat16)]),   # cached RMSNorm(x)
        compiler_params=pltpu.CompilerParams(
            dimension_semantics=("parallel", "arbitrary"),
            vmem_limit_bytes=vmem_limit),
    )(x2d, gamma, wqkv_g)


# ---------------------------------------------------------------------------
# Kernel 2: per-(batch, head-group) RoPE + causal softmax + PV.
# ---------------------------------------------------------------------------
def _attention_kernel(q_ref, k_ref, v_ref, cq_ref, sq_ref, ck_ref, sk_ref, o_ref,
                      *, hpg, hd, causal):
    f32, bf = jnp.float32, jnp.bfloat16
    hd2 = hd // 2
    S = q_ref.shape[1]
    q_all = q_ref[0].astype(f32)
    k_all = k_ref[0].astype(f32)
    v_all = v_ref[0]
    cq, sq = cq_ref[...], sq_ref[...]          # q-side tables (1/sqrt(hd) folded in)
    ck, sk = ck_ref[...], sk_ref[...]
    if causal:
        row = lax.broadcasted_iota(jnp.int32, (S, S), 0)
        col = lax.broadcasted_iota(jnp.int32, (S, S), 1)
        keep = col <= row
    dn = (((1,), (1,)), ((), ()))              # q @ k^T, contract full head_dim
    outs = []
    for h in range(hpg):
        qh = q_all[:, h * hd:(h + 1) * hd]
        kh = k_all[:, h * hd:(h + 1) * hd]
        vh = v_all[:, h * hd:(h + 1) * hd]
        # Interleaved RoPE on the [even | odd]-permuted layout (pure f32 VPU math).
        qe, qo = qh[:, :hd2], qh[:, hd2:]
        ke, ko = kh[:, :hd2], kh[:, hd2:]
        q_rot = jnp.concatenate([qe * cq - qo * sq, qe * sq + qo * cq], axis=-1)
        k_rot = jnp.concatenate([ke * ck - ko * sk, ke * sk + ko * ck], axis=-1)
        s = lax.dot_general(q_rot.astype(bf), k_rot.astype(bf), dn,
                            preferred_element_type=f32)
        if causal:
            s = jnp.where(keep, s, -1e30)
        m = jnp.max(s, axis=-1, keepdims=True)
        p = jnp.exp(s - m)
        l = jnp.sum(p, axis=-1, keepdims=True)
        ctx = jnp.dot(p.astype(bf), vh, preferred_element_type=f32)
        # Deferred softmax normalization: scale the (S, hd) context, not the SxS scores.
        outs.append(ctx * pl.reciprocal(l, approx=True))
    ctx_g = outs[0] if hpg == 1 else jnp.concatenate(outs, axis=-1)
    o_ref[0] = ctx_g.astype(o_ref.dtype)


def _attention(qkv_g, cq, sq, ck, sk, *, B, S, hpg, hd, causal, vmem_limit):
    n_slabs, Mp, gw = qkv_g.shape
    n_groups = n_slabs // 3
    assert gw == hpg * hd
    q_spec = pl.BlockSpec((1, S, gw), lambda b, g: (g, b, 0))
    k_spec = pl.BlockSpec((1, S, gw), lambda b, g: (n_groups + g, b, 0))
    v_spec = pl.BlockSpec((1, S, gw), lambda b, g: (2 * n_groups + g, b, 0))
    rot_spec = pl.BlockSpec((S, hd // 2), lambda b, g: (0, 0))
    return pl.pallas_call(
        functools.partial(_attention_kernel, hpg=hpg, hd=hd, causal=causal),
        out_shape=jax.ShapeDtypeStruct((n_groups, Mp, gw), jnp.bfloat16),
        grid_spec=pltpu.PrefetchScalarGridSpec(
            num_scalar_prefetch=0,
            grid=(B, n_groups),
            in_specs=[q_spec, k_spec, v_spec, rot_spec, rot_spec, rot_spec, rot_spec],
            out_specs=pl.BlockSpec((1, S, gw), lambda b, g: (g, b, 0))),
        compiler_params=pltpu.CompilerParams(
            dimension_semantics=("parallel", "parallel"),
            vmem_limit_bytes=vmem_limit),
    )(qkv_g, qkv_g, qkv_g, cq, sq, ck, sk)


# ---------------------------------------------------------------------------
# Kernel 3: output projection (group-contracted, N-tiled weight) + residual.
# ---------------------------------------------------------------------------
def _proj_residual_kernel(ctx_ref, w_ref, res_ref, o_ref, *, n_groups):
    acc = res_ref[...]
    for g in range(n_groups):
        acc = acc + jnp.dot(ctx_ref[g], w_ref[g], preferred_element_type=jnp.float32)
    o_ref[...] = acc


def _proj_residual(ctx_g, wproj_g, x2d, *, tm, tn, vmem_limit):
    n_groups, Mp, gw = ctx_g.shape
    D = wproj_g.shape[-1]
    return pl.pallas_call(
        functools.partial(_proj_residual_kernel, n_groups=n_groups),
        out_shape=jax.ShapeDtypeStruct((Mp, D), jnp.float32),
        grid_spec=pltpu.PrefetchScalarGridSpec(
            num_scalar_prefetch=0,
            grid=(Mp // tm, D // tn),
            in_specs=[
                pl.BlockSpec((n_groups, tm, gw), lambda i, j: (0, i, 0)),
                pl.BlockSpec((n_groups, gw, tn), lambda i, j: (0, 0, j)),
                pl.BlockSpec((tm, tn), lambda i, j: (i, j)),
            ],
            out_specs=pl.BlockSpec((tm, tn), lambda i, j: (i, j))),
        compiler_params=pltpu.CompilerParams(
            dimension_semantics=("parallel", "parallel"),
            vmem_limit_bytes=vmem_limit),
    )(ctx_g, wproj_g, x2d)


# ---------------------------------------------------------------------------
# Kernel 4: SwiGLU FFN, hidden dim tiled (reduction axis last) + f32 accumulator.
# ---------------------------------------------------------------------------
def _ffn_kernel(h_ref, g_ref, w1_ref, w3_ref, w2_ref, o_ref, xn_ref, acc_ref, *, eps):
    hi = pl.program_id(1)

    @pl.when(hi == 0)
    def _():
        x = h_ref[...].astype(jnp.float32)
        ms = jnp.mean(x * x, axis=-1, keepdims=True)
        xn_ref[...] = (x * lax.rsqrt(ms + eps) * g_ref[...]).astype(xn_ref.dtype)
        acc_ref[...] = jnp.zeros_like(acc_ref)

    xn = xn_ref[...]
    hg = jnp.dot(xn, w1_ref[...], preferred_element_type=jnp.float32)
    hv = jnp.dot(xn, w3_ref[...], preferred_element_type=jnp.float32)
    gated = hg * jax.nn.sigmoid(hg) * hv              # SiLU gate kept in f32 (VPU/EUP)
    acc_ref[...] += jnp.dot(gated.astype(w2_ref.dtype), w2_ref[...],
                            preferred_element_type=jnp.float32)

    @pl.when(hi == pl.num_programs(1) - 1)
    def _():
        o_ref[...] = h_ref[...] + acc_ref[...]


def _ffn(h2d, gamma, w1p, w3p, w2p, *, eps, tm, tile_h, vmem_limit):
    Mp, D = h2d.shape
    Hp = w2p.shape[0]
    th = min(tile_h, Hp)
    while Hp % th:            # largest multiple of 128 that divides the padded hidden dim
        th -= 128
    nH = Hp // th
    return pl.pallas_call(
        functools.partial(_ffn_kernel, eps=eps),
        out_shape=jax.ShapeDtypeStruct((Mp, D), jnp.float32),
        grid_spec=pltpu.PrefetchScalarGridSpec(
            num_scalar_prefetch=0,
            grid=(Mp // tm, nH),
            in_specs=[
                pl.BlockSpec((tm, D), lambda i, h: (i, 0)),   # residual / norm input
                pl.BlockSpec((1, D), lambda i, h: (0, 0)),    # ffn_norm weight
                pl.BlockSpec((D, th), lambda i, h: (0, h)),   # fc1 gate tile
                pl.BlockSpec((D, th), lambda i, h: (0, h)),   # fc1 value tile
                pl.BlockSpec((th, D), lambda i, h: (h, 0)),   # fc2 tile
            ],
            out_specs=pl.BlockSpec((tm, D), lambda i, h: (i, 0)),
            scratch_shapes=[pltpu.VMEM((tm, D), jnp.bfloat16),   # cached RMSNorm(h)
                            pltpu.VMEM((tm, D), jnp.float32)]),  # f32 accumulator
        compiler_params=pltpu.CompilerParams(
            dimension_semantics=("parallel", "arbitrary"),
            vmem_limit_bytes=vmem_limit),
    )(h2d, gamma, w1p, w3p, w2p)


# ---------------------------------------------------------------------------
# Full TransformerBlock forward
# ---------------------------------------------------------------------------
@functools.partial(jax.jit, static_argnames=("n_heads", "causal", "eps",
                                              "tile_m", "tile_n", "tile_h"))
def transformer_block(x, packed, freqs_cis, *, n_heads, causal=True, eps=1e-5,
                      tile_m=256, tile_n=512, tile_h=256):
    """x: [B, S, D] f32. `packed` comes from prepare_params() (weights pre-packed bf16).

    Tile defaults target v7x's 64 MiB VMEM; on v5e/v6e (128 MiB) raise tile_m/tile_h to
    512-1024 to halve grid-step count and per-row-tile weight re-streaming.
    """
    B, S, D = x.shape
    assert D % n_heads == 0
    hd = D // n_heads
    assert S % 8 == 0, "sequence length must be a multiple of 8"
    assert tile_m % 8 == 0 and tile_n % 128 == 0 and tile_h % 128 == 0

    n_slabs, _, gw = packed["wqkv_g"].shape
    n_groups = n_slabs // 3
    hpg = gw // hd
    assert n_groups * hpg == n_heads, "packed weights do not match n_heads"

    M = B * S
    tm = min(tile_m, _round_up(M, 8))
    Mp = _round_up(M, tm)
    tn = tile_n if (tile_n <= D and D % tile_n == 0) else D
    vmem_limit = _vmem_limit_bytes()

    x2d = x.reshape(M, D)
    if Mp != M:
        x2d = jnp.pad(x2d, ((0, Mp - M), (0, 0)))

    # RoPE tables (S, hd/2); 1/sqrt(hd) folded into the q-side tables.
    cos = freqs_cis[..., 0].astype(jnp.float32)
    sin = freqs_cis[..., 1].astype(jnp.float32)
    scale = float(hd) ** -0.5
    cq, sq = cos * scale, sin * scale

    # ---- attention ---------------------------------------------------------
    qkv_g = _norm_qkv(x2d, packed["attn_norm_w"], packed["wqkv_g"],
                      eps=eps, tm=tm, vmem_limit=vmem_limit)
    ctx_g = _attention(qkv_g, cq, sq, cos, sin, B=B, S=S, hpg=hpg, hd=hd,
                       causal=causal, vmem_limit=vmem_limit)
    h2d = _proj_residual(ctx_g, packed["wproj_g"], x2d, tm=tm, tn=tn,
                         vmem_limit=vmem_limit)          # h = x + proj(attn)

    # ---- SwiGLU feed-forward ----------------------------------------------
    out2d = _ffn(h2d, packed["ffn_norm_w"], packed["w1p"], packed["w3p"],
                 packed["w2p"], eps=eps, tm=tm, tile_h=tile_h, vmem_limit=vmem_limit)
    return out2d[:M].reshape(B, S, D)


# ---------------------------------------------------------------------------
# Pure-JAX reference mirroring the PyTorch module (f32 throughout)
# ---------------------------------------------------------------------------
def _ref_block(x, params, freqs_cis, *, n_heads, causal=True, eps=1e-5):
    B, S, D = x.shape
    hd = D // n_heads

    def rms(v, w):
        return v * jax.lax.rsqrt(jnp.mean(v * v, axis=-1, keepdims=True) + eps) * w

    xn = rms(x, params["attn_norm_w"])
    qkv = jnp.transpose((xn @ params["wqkv"]).reshape(B, S, 3, n_heads, hd),
                        (2, 0, 3, 1, 4))
    q, k, v = qkv[0], qkv[1], qkv[2]

    def rot(t):
        tr, ti = t[..., 0::2], t[..., 1::2]
        cos, sin = freqs_cis[..., 0], freqs_cis[..., 1]
        rr = tr * cos - ti * sin
        ri = tr * sin + ti * cos
        return jnp.stack([rr, ri], axis=-1).reshape(t.shape)

    q, k = rot(q), rot(k)
    s = jnp.einsum("bhqd,bhkd->bhqk", q, k) * (float(hd) ** -0.5)
    if causal:
        mask = jnp.tril(jnp.ones((S, S), dtype=bool))
        s = jnp.where(mask, s, -jnp.inf)
    p = jax.nn.softmax(s, axis=-1)
    ctx = jnp.einsum("bhqk,bhkd->bhqd", p, v)
    ctx = jnp.transpose(ctx, (0, 2, 1, 3)).reshape(B, S, D)
    h = x + ctx @ params["wproj"]

    hn = rms(h, params["ffn_norm_w"])
    gate = jax.nn.silu(hn @ params["w1"]) * (hn @ params["w3"])
    return h + gate @ params["w2"]


if __name__ == "__main__":
    # Small shapes consistent with the module: batch=2, seq=8, hidden_dim=32, 4 heads.
    B, S, D, n_heads, mlp_ratio, eps = 2, 8, 32, 4, 4.0, 1e-5
    hd = D // n_heads
    # SwiGLUFFNFused hidden sizing (matches the PyTorch module): -> 88
    hidden = int(D * mlp_ratio)
    hidden = (int(hidden * 2 / 3) + 7) // 8 * 8

    key = jax.random.PRNGKey(0)
    ks = jax.random.split(key, 7)
    x = jax.random.normal(ks[0], (B, S, D), dtype=jnp.float32)
    w_scale = 0.05
    # nn.Linear weights are [out, in]; transpose to [in, out] for x @ W layout.
    wqkv = (jax.random.normal(ks[1], (3 * D, D), jnp.float32) * w_scale).T    # [D, 3D]
    wproj = (jax.random.normal(ks[2], (D, D), jnp.float32) * w_scale).T       # [D, D]
    wfc1 = (jax.random.normal(ks[3], (2 * hidden, D), jnp.float32) * w_scale).T  # [D, 2H]
    w2 = (jax.random.normal(ks[4], (D, hidden), jnp.float32) * w_scale).T     # [H, D]
    attn_norm_w = 1.0 + 0.1 * jax.random.normal(ks[5], (D,), jnp.float32)
    ffn_norm_w = 1.0 + 0.1 * jax.random.normal(ks[6], (D,), jnp.float32)

    params = dict(wqkv=wqkv, wproj=wproj,
                  w1=wfc1[:, :hidden], w3=wfc1[:, hidden:], w2=w2,
                  attn_norm_w=attn_norm_w, ffn_norm_w=ffn_norm_w)

    # freqs_cis: [S, hd/2, 2] = (cos, sin), llama-style angles.
    half = hd // 2
    inv_freq = 1.0 / (10000.0 ** (jnp.arange(0, half, dtype=jnp.float32) / half))
    ang = jnp.outer(jnp.arange(S, dtype=jnp.float32), inv_freq)
    freqs_cis = jnp.stack([jnp.cos(ang), jnp.sin(ang)], axis=-1)

    # One-time offline packing (outside the jitted step function).
    packed = prepare_params(params, n_heads=n_heads)

    y = transformer_block(x, packed, freqs_cis, n_heads=n_heads, causal=True, eps=eps)
    jax.block_until_ready(y)

    y_ref = _ref_block(x, params, freqs_cis, n_heads=n_heads, causal=True, eps=eps)
    assert y.shape == (B, S, D), y.shape
    max_err = float(jnp.max(jnp.abs(y - y_ref)))
    # bf16 matmul operands / bf16 inter-kernel activations (f32 accumulation) ->
    # relaxed tolerance vs. the f32 reference.
    assert jnp.allclose(y, y_ref, atol=3e-2, rtol=3e-2), f"mismatch: max abs err {max_err}"
    print("KERNEL_OK")
</pallas_src>

<mosaic_0001>
module attributes {stable_mosaic.version = 11 : i64} {
  func.func @_norm_qkv_kernel(%arg0: i32, %arg1: i32, %arg2: memref<16x32xf32, #tpu.memory_space<vmem>>, %arg3: memref<1x32xf32, #tpu.memory_space<vmem>>, %arg4: memref<1x32x32xbf16, #tpu.memory_space<vmem>>, %arg5: memref<1x16x32xbf16, #tpu.memory_space<vmem>>, %arg6: memref<16x32xbf16, #tpu.memory_space<vmem>>) attributes {dimension_semantics = [#tpu.dimension_semantics<parallel>, #tpu.dimension_semantics<arbitrary>], iteration_bounds = array<i64: 1, 3>, scalar_prefetch = 0 : i64, scratch_operands = 1 : i64, tpu.core_type = #tpu.core_type<tc>, window_params = [{transform_indices = @transform_0, window_bounds = array<i64: 16, 32>}, {pipeline_mode = #tpu.pipeline_mode<synchronous>, transform_indices = @transform_1, window_bounds = array<i64: 1, 32>}, {transform_indices = @transform_2, window_bounds = array<i64: 1, 32, 32>}, {transform_indices = @transform_3, window_bounds = array<i64: 1, 16, 32>}]} {
    %c0_i32 = arith.constant 0 : i32
    %0 = arith.cmpi eq, %arg1, %c0_i32 : i32
    %1 = arith.extui %0 : i1 to i32
    %c0_i32_0 = arith.constant 0 : i32
    %2 = arith.cmpi ne, %1, %c0_i32_0 : i32
    scf.if %2 {
      %c0_8 = arith.constant 0 : index
      %c0_9 = arith.constant 0 : index
      %11 = vector.load %arg2[%c0_8, %c0_9] : memref<16x32xf32, #tpu.memory_space<vmem>>, vector<16x32xf32>
      %12 = arith.mulf %11, %11 : vector<16x32xf32>
      %cst_10 = arith.constant dense<0.000000e+00> : vector<16xf32>
      %13 = vector.multi_reduction <add>, %12, %cst_10 [1] : vector<16x32xf32> to vector<16xf32>
      %14 = vector.shape_cast %13 : vector<16xf32> to vector<16x1xf32>
      %cst_11 = arith.constant 3.200000e+01 : f32
      %15 = vector.broadcast %cst_11 : f32 to vector<16x1xf32>
      %16 = arith.divf %14, %15 : vector<16x1xf32>
      %cst_12 = arith.constant 9.99999974E-6 : f32
      %17 = vector.broadcast %cst_12 : f32 to vector<16x1xf32>
      %18 = arith.addf %16, %17 : vector<16x1xf32>
      %19 = math.rsqrt %18 : vector<16x1xf32>
      %20 = vector.broadcast %19 : vector<16x1xf32> to vector<16x32xf32>
      %21 = arith.mulf %11, %20 : vector<16x32xf32>
      %c0_13 = arith.constant 0 : index
      %c0_14 = arith.constant 0 : index
      %22 = vector.load %arg3[%c0_13, %c0_14] : memref<1x32xf32, #tpu.memory_space<vmem>>, vector<1x32xf32>
      %23 = vector.broadcast %22 : vector<1x32xf32> to vector<16x32xf32>
      %24 = arith.mulf %21, %23 : vector<16x32xf32>
      %25 = arith.truncf %24 : vector<16x32xf32> to vector<16x32xbf16>
      %c0_15 = arith.constant 0 : index
      %c0_16 = arith.constant 0 : index
      %26 = vector.load %arg6[%c0_15, %c0_16] : memref<16x32xbf16, #tpu.memory_space<vmem>>, vector<16x32xbf16>
      tpu.vector_store %arg6[%c0_15, %c0_16], %25 {strides = array<i32>} : memref<16x32xbf16, #tpu.memory_space<vmem>>, vector<16x32xbf16>,
    } else {
    }
    %c0 = arith.constant 0 : index
    %c0_1 = arith.constant 0 : index
    %3 = vector.load %arg6[%c0, %c0_1] : memref<16x32xbf16, #tpu.memory_space<vmem>>, vector<16x32xbf16>
    %c0_2 = arith.constant 0 : index
    %c0_3 = arith.constant 0 : index
    %c0_4 = arith.constant 0 : index
    %4 = vector.load %arg4[%c0_2, %c0_3, %c0_4] : memref<1x32x32xbf16, #tpu.memory_space<vmem>>, vector<1x32x32xbf16>
    %5 = vector.shape_cast %4 : vector<1x32x32xbf16> to vector<32x32xbf16>
    %cst = arith.constant dense<0.000000e+00> : vector<16x32xf32>
    %6 = tpu.matmul %3, %5, %cst {dimension_numbers = #tpu.dot_dimension_numbers<[1], [0], [0], [1], [0, 0, 1, 1], [], []>} : vector<16x32xbf16>, vector<32x32xbf16>, vector<16x32xf32> -> vector<16x32xf32>
    %7 = arith.truncf %6 : vector<16x32xf32> to vector<16x32xbf16>
    %c0_5 = arith.constant 0 : index
    %c0_6 = arith.constant 0 : index
    %c0_7 = arith.constant 0 : index
    %8 = vector.load %arg5[%c0_5, %c0_6, %c0_7] : memref<1x16x32xbf16, #tpu.memory_space<vmem>>, vector<1x16x32xbf16>
    %9 = vector.shape_cast %8 : vector<1x16x32xbf16> to vector<16x32xbf16>
    %10 = vector.shape_cast %7 : vector<16x32xbf16> to vector<1x16x32xbf16>
    tpu.vector_store %arg5[%c0_5, %c0_6, %c0_7], %10 {strides = array<i32>} : memref<1x16x32xbf16, #tpu.memory_space<vmem>>, vector<1x16x32xbf16>,
    return
  }
  func.func @transform_0(%arg0: i32, %arg1: i32) -> (i32, i32) {
    %c0_i32 = arith.constant 0 : i32
    %c0_i32_0 = arith.constant 0 : i32
    return %arg0, %c0_i32 : i32, i32
  }
  func.func @transform_1(%arg0: i32, %arg1: i32) -> (i32, i32) {
    %c0_i32 = arith.constant 0 : i32
    %c0_i32_0 = arith.constant 0 : i32
    %c0_i32_1 = arith.constant 0 : i32
    return %c0_i32, %c0_i32_0 : i32, i32
  }
  func.func @transform_2(%arg0: i32, %arg1: i32) -> (i32, i32, i32) {
    %c0_i32 = arith.constant 0 : i32
    %c0_i32_0 = arith.constant 0 : i32
    %c0_i32_1 = arith.constant 0 : i32
    return %arg1, %c0_i32, %c0_i32_0 : i32, i32, i32
  }
  func.func @transform_3(%arg0: i32, %arg1: i32) -> (i32, i32, i32) {
    %c0_i32 = arith.constant 0 : i32
    %c0_i32_0 = arith.constant 0 : i32
    return %arg1, %arg0, %c0_i32 : i32, i32, i32
  }
}

module attributes {stable_mosaic.version = 11 : i64} {
  func.func @_proj_residual_kernel(%arg0: i32, %arg1: i32, %arg2: memref<1x16x32xbf16, #tpu.memory_space<vmem>>, %arg3: memref<1x32x32xbf16, #tpu.memory_space<vmem>>, %arg4: memref<16x32xf32, #tpu.memory_space<vmem>>, %arg5: memref<16x32xf32, #tpu.memory_space<vmem>>) attributes {dimension_semantics = [#tpu.dimension_semantics<parallel>, #tpu.dimension_semantics<parallel>], iteration_bounds = array<i64: 1, 1>, scalar_prefetch = 0 : i64, scratch_operands = 0 : i64, tpu.core_type = #tpu.core_type<tc>, window_params = [{transform_indices = @transform_0, window_bounds = array<i64: 1, 16, 32>}, {transform_indices = @transform_1, window_bounds = array<i64: 1, 32, 32>}, {transform_indices = @transform_2, window_bounds = array<i64: 16, 32>}, {transform_indices = @transform_3, window_bounds = array<i64: 16, 32>}]} {
    %c0 = arith.constant 0 : index
    %c0_0 = arith.constant 0 : index
    %0 = vector.load %arg4[%c0, %c0_0] : memref<16x32xf32, #tpu.memory_space<vmem>>, vector<16x32xf32>
    %c0_1 = arith.constant 0 : index
    %c0_2 = arith.constant 0 : index
    %c0_3 = arith.constant 0 : index
    %1 = vector.load %arg2[%c0_1, %c0_2, %c0_3] : memref<1x16x32xbf16, #tpu.memory_space<vmem>>, vector<1x16x32xbf16>
    %2 = vector.shape_cast %1 : vector<1x16x32xbf16> to vector<16x32xbf16>
    %c0_4 = arith.constant 0 : index
    %c0_5 = arith.constant 0 : index
    %c0_6 = arith.constant 0 : index
    %3 = vector.load %arg3[%c0_4, %c0_5, %c0_6] : memref<1x32x32xbf16, #tpu.memory_space<vmem>>, vector<1x32x32xbf16>
    %4 = vector.shape_cast %3 : vector<1x32x32xbf16> to vector<32x32xbf16>
    %cst = arith.constant dense<0.000000e+00> : vector<16x32xf32>
    %5 = tpu.matmul %2, %4, %cst {dimension_numbers = #tpu.dot_dimension_numbers<[1], [0], [0], [1], [0, 0, 1, 1], [], []>} : vector<16x32xbf16>, vector<32x32xbf16>, vector<16x32xf32> -> vector<16x32xf32>
    %6 = arith.addf %0, %5 : vector<16x32xf32>
    %c0_7 = arith.constant 0 : index
    %c0_8 = arith.constant 0 : index
    %7 = vector.load %arg5[%c0_7, %c0_8] : memref<16x32xf32, #tpu.memory_space<vmem>>, vector<16x32xf32>
    tpu.vector_store %arg5[%c0_7, %c0_8], %6 {strides = array<i32>} : memref<16x32xf32, #tpu.memory_space<vmem>>, vector<16x32xf32>,
    return
  }
  func.func @transform_0(%arg0: i32, %arg1: i32) -> (i32, i32, i32) {
    %c0_i32 = arith.constant 0 : i32
    %c0_i32_0 = arith.constant 0 : i32
    %c0_i32_1 = arith.constant 0 : i32
    return %c0_i32, %arg0, %c0_i32_0 : i32, i32, i32
  }
  func.func @transform_1(%arg0: i32, %arg1: i32) -> (i32, i32, i32) {
    %c0_i32 = arith.constant 0 : i32
    %c0_i32_0 = arith.constant 0 : i32
    %c0_i32_1 = arith.constant 0 : i32
    return %c0_i32, %c0_i32_0, %arg1 : i32, i32, i32
  }
  func.func @transform_2(%arg0: i32, %arg1: i32) -> (i32, i32) {
    %c0_i32 = arith.constant 0 : i32
    return %arg0, %arg1 : i32, i32
  }
  func.func @transform_3(%arg0: i32, %arg1: i32) -> (i32, i32) {
    %c0_i32 = arith.constant 0 : i32
    return %arg0, %arg1 : i32, i32
  }
}

module attributes {stable_mosaic.version = 11 : i64} {
  func.func @_attention_kernel(%arg0: i32, %arg1: i32, %arg2: memref<1x8x32xbf16, #tpu.memory_space<vmem>>, %arg3: memref<1x8x32xbf16, #tpu.memory_space<vmem>>, %arg4: memref<1x8x32xbf16, #tpu.memory_space<vmem>>, %arg5: memref<8x4xf32, #tpu.memory_space<vmem>>, %arg6: memref<8x4xf32, #tpu.memory_space<vmem>>, %arg7: memref<8x4xf32, #tpu.memory_space<vmem>>, %arg8: memref<8x4xf32, #tpu.memory_space<vmem>>, %arg9: memref<1x8x32xbf16, #tpu.memory_space<vmem>>) attributes {dimension_semantics = [#tpu.dimension_semantics<parallel>, #tpu.dimension_semantics<parallel>], iteration_bounds = array<i64: 2, 1>, scalar_prefetch = 0 : i64, scratch_operands = 0 : i64, tpu.core_type = #tpu.core_type<tc>, window_params = [{transform_indices = @transform_0, window_bounds = array<i64: 1, 8, 32>}, {transform_indices = @transform_1, window_bounds = array<i64: 1, 8, 32>}, {transform_indices = @transform_2, window_bounds = array<i64: 1, 8, 32>}, {pipeline_mode = #tpu.pipeline_mode<synchronous>, transform_indices = @transform_3, window_bounds = array<i64: 8, 4>}, {pipeline_mode = #tpu.pipeline_mode<synchronous>, transform_indices = @transform_4, window_bounds = array<i64: 8, 4>}, {pipeline_mode = #tpu.pipeline_mode<synchronous>, transform_indices = @transform_5, window_bounds = array<i64: 8, 4>}, {pipeline_mode = #tpu.pipeline_mode<synchronous>, transform_indices = @transform_6, window_bounds = array<i64: 8, 4>}, {transform_indices = @transform_7, window_bounds = array<i64: 1, 8, 32>}]} {
    %c0 = arith.constant 0 : index
    %c0_0 = arith.constant 0 : index
    %c0_1 = arith.constant 0 : index
    %0 = vector.load %arg2[%c0, %c0_0, %c0_1] : memref<1x8x32xbf16, #tpu.memory_space<vmem>>, vector<1x8x32xbf16>
    %1 = vector.shape_cast %0 : vector<1x8x32xbf16> to vector<8x32xbf16>
    %2 = arith.extf %1 : vector<8x32xbf16> to vector<8x32xf32>
    %c0_2 = arith.constant 0 : index
    %c0_3 = arith.constant 0 : index
    %c0_4 = arith.constant 0 : index
    %3 = vector.load %arg3[%c0_2, %c0_3, %c0_4] : memref<1x8x32xbf16, #tpu.memory_space<vmem>>, vector<1x8x32xbf16>
    %4 = vector.shape_cast %3 : vector<1x8x32xbf16> to vector<8x32xbf16>
    %5 = arith.extf %4 : vector<8x32xbf16> to vector<8x32xf32>
    %c0_5 = arith.constant 0 : index
    %c0_6 = arith.constant 0 : index
    %c0_7 = arith.constant 0 : index
    %6 = vector.load %arg4[%c0_5, %c0_6, %c0_7] : memref<1x8x32xbf16, #tpu.memory_space<vmem>>, vector<1x8x32xbf16>
    %7 = vector.shape_cast %6 : vector<1x8x32xbf16> to vector<8x32xbf16>
    %c0_8 = arith.constant 0 : index
    %c0_9 = arith.constant 0 : index
    %8 = vector.load %arg5[%c0_8, %c0_9] : memref<8x4xf32, #tpu.memory_space<vmem>>, vector<8x4xf32>
    %c0_10 = arith.constant 0 : index
    %c0_11 = arith.constant 0 : index
    %9 = vector.load %arg6[%c0_10, %c0_11] : memref<8x4xf32, #tpu.memory_space<vmem>>, vector<8x4xf32>
    %c0_12 = arith.constant 0 : index
    %c0_13 = arith.constant 0 : index
    %10 = vector.load %arg7[%c0_12, %c0_13] : memref<8x4xf32, #tpu.memory_space<vmem>>, vector<8x4xf32>
    %c0_14 = arith.constant 0 : index
    %c0_15 = arith.constant 0 : index
    %11 = vector.load %arg8[%c0_14, %c0_15] : memref<8x4xf32, #tpu.memory_space<vmem>>, vector<8x4xf32>
    %12 = tpu.iota {dimensions = array<i32: 0>} : vector<8x8xi32>
    %13 = tpu.iota {dimensions = array<i32: 1>} : vector<8x8xi32>
    %14 = arith.cmpi sle, %13, %12 : vector<8x8xi32>
    %15 = vector.extract_strided_slice %2 {offsets = [0, 0], sizes = [8, 8], strides = [1, 1]} : vector<8x32xf32> to vector<8x8xf32>
    %16 = vector.extract_strided_slice %5 {offsets = [0, 0], sizes = [8, 8], strides = [1, 1]} : vector<8x32xf32> to vector<8x8xf32>
    %17 = vector.extract_strided_slice %7 {offsets = [0, 0], sizes = [8, 8], strides = [1, 1]} : vector<8x32xbf16> to vector<8x8xbf16>
    %18 = vector.extract_strided_slice %15 {offsets = [0, 0], sizes = [8, 4], strides = [1, 1]} : vector<8x8xf32> to vector<8x4xf32>
    %19 = vector.extract_strided_slice %15 {offsets = [0, 4], sizes = [8, 4], strides = [1, 1]} : vector<8x8xf32> to vector<8x4xf32>
    %20 = vector.extract_strided_slice %16 {offsets = [0, 0], sizes = [8, 4], strides = [1, 1]} : vector<8x8xf32> to vector<8x4xf32>
    %21 = vector.extract_strided_slice %16 {offsets = [0, 4], sizes = [8, 4], strides = [1, 1]} : vector<8x8xf32> to vector<8x4xf32>
    %22 = arith.mulf %18, %8 : vector<8x4xf32>
    %23 = arith.mulf %19, %9 : vector<8x4xf32>
    %24 = arith.subf %22, %23 : vector<8x4xf32>
    %25 = arith.mulf %18, %9 : vector<8x4xf32>
    %26 = arith.mulf %19, %8 : vector<8x4xf32>
    %27 = arith.addf %25, %26 : vector<8x4xf32>
    %28 = tpu.concatenate %24, %27 in 1 : vector<8x4xf32>, vector<8x4xf32> -> vector<8x8xf32>
    %29 = arith.mulf %20, %10 : vector<8x4xf32>
    %30 = arith.mulf %21, %11 : vector<8x4xf32>
    %31 = arith.subf %29, %30 : vector<8x4xf32>
    %32 = arith.mulf %20, %11 : vector<8x4xf32>
    %33 = arith.mulf %21, %10 : vector<8x4xf32>
    %34 = arith.addf %32, %33 : vector<8x4xf32>
    %35 = tpu.concatenate %31, %34 in 1 : vector<8x4xf32>, vector<8x4xf32> -> vector<8x8xf32>
    %36 = arith.truncf %28 : vector<8x8xf32> to vector<8x8xbf16>
    %37 = arith.truncf %35 : vector<8x8xf32> to vector<8x8xbf16>
    %cst = arith.constant dense<0.000000e+00> : vector<8x8xf32>
    %38 = tpu.matmul %36, %37, %cst {dimension_numbers = #tpu.dot_dimension_numbers<[1], [1], [0], [0], [0, 0, 1, 0], [], []>} : vector<8x8xbf16>, vector<8x8xbf16>, vector<8x8xf32> -> vector<8x8xf32>
    %cst_16 = arith.constant -1.000000e+30 : f32
    %39 = vector.broadcast %cst_16 : f32 to vector<8x8xf32>
    %40 = arith.select %14, %38, %39 : vector<8x8xi1>, vector<8x8xf32>
    %cst_17 = arith.constant dense<0xFF800000> : vector<8xf32>
    %41 = vector.multi_reduction <maximumf>, %40, %cst_17 [1] : vector<8x8xf32> to vector<8xf32>
    %42 = vector.shape_cast %41 : vector<8xf32> to vector<8x1xf32>
    %43 = vector.broadcast %42 : vector<8x1xf32> to vector<8x8xf32>
    %44 = arith.subf %40, %43 : vector<8x8xf32>
    %45 = math.exp %44 : vector<8x8xf32>
    %cst_18 = arith.constant dense<0.000000e+00> : vector<8xf32>
    %46 = vector.multi_reduction <add>, %45, %cst_18 [1] : vector<8x8xf32> to vector<8xf32>
    %47 = vector.shape_cast %46 : vector<8xf32> to vector<8x1xf32>
    %48 = arith.truncf %45 : vector<8x8xf32> to vector<8x8xbf16>
    %cst_19 = arith.constant dense<0.000000e+00> : vector<8x8xf32>
    %49 = tpu.matmul %48, %17, %cst_19 {dimension_numbers = #tpu.dot_dimension_numbers<[1], [0], [0], [1], [0, 0, 1, 1], [], []>} : vector<8x8xbf16>, vector<8x8xbf16>, vector<8x8xf32> -> vector<8x8xf32>
    %50 = tpu.reciprocal %47 {approx = true} : vector<8x1xf32> -> vector<8x1xf32>
    %51 = vector.broadcast %50 : vector<8x1xf32> to vector<8x8xf32>
    %52 = arith.mulf %49, %51 : vector<8x8xf32>
    %53 = vector.extract_strided_slice %2 {offsets = [0, 8], sizes = [8, 8], strides = [1, 1]} : vector<8x32xf32> to vector<8x8xf32>
    %54 = vector.extract_strided_slice %5 {offsets = [0, 8], sizes = [8, 8], strides = [1, 1]} : vector<8x32xf32> to vector<8x8xf32>
    %55 = vector.extract_strided_slice %7 {offsets = [0, 8], sizes = [8, 8], strides = [1, 1]} : vector<8x32xbf16> to vector<8x8xbf16>
    %56 = vector.extract_strided_slice %53 {offsets = [0, 0], sizes = [8, 4], strides = [1, 1]} : vector<8x8xf32> to vector<8x4xf32>
    %57 = vector.extract_strided_slice %53 {offsets = [0, 4], sizes = [8, 4], strides = [1, 1]} : vector<8x8xf32> to vector<8x4xf32>
    %58 = vector.extract_strided_slice %54 {offsets = [0, 0], sizes = [8, 4], strides = [1, 1]} : vector<8x8xf32> to vector<8x4xf32>
    %59 = vector.extract_strided_slice %54 {offsets = [0, 4], sizes = [8, 4], strides = [1, 1]} : vector<8x8xf32> to vector<8x4xf32>
    %60 = arith.mulf %56, %8 : vector<8x4xf32>
    %61 = arith.mulf %57, %9 : vector<8x4xf32>
    %62 = arith.subf %60, %61 : vector<8x4xf32>
    %63 = arith.mulf %56, %9 : vector<8x4xf32>
    %64 = arith.mulf %57, %8 : vector<8x4xf32>
    %65 = arith.addf %63, %64 : vector<8x4xf32>
    %66 = tpu.concatenate %62, %65 in 1 : vector<8x4xf32>, vector<8x4xf32> -> vector<8x8xf32>
    %67 = arith.mulf %58, %10 : vector<8x4xf32>
    %68 = arith.mulf %59, %11 : vector<8x4xf32>
    %69 = arith.subf %67, %68 : vector<8x4xf32>
    %70 = arith.mulf %58, %11 : vector<8x4xf32>
    %71 = arith.mulf %59, %10 : vector<8x4xf32>
    %72 = arith.addf %70, %71 : vector<8x4xf32>
    %73 = tpu.concatenate %69, %72 in 1 : vector<8x4xf32>, vector<8x4xf32> -> vector<8x8xf32>
    %74 = arith.truncf %66 : vector<8x8xf32> to vector<8x8xbf16>
    %75 = arith.truncf %73 : vector<8x8xf32> to vector<8x8xbf16>
    %cst_20 = arith.constant dense<0.000000e+00> : vector<8x8xf32>
    %76 = tpu.matmul %74, %75, %cst_20 {dimension_numbers = #tpu.dot_dimension_numbers<[1], [1], [0], [0], [0, 0, 1, 0], [], []>} : vector<8x8xbf16>, vector<8x8xbf16>, vector<8x8xf32> -> vector<8x8xf32>
    %cst_21 = arith.constant -1.000000e+30 : f32
    %77 = vector.broadcast %cst_21 : f32 to vector<8x8xf32>
    %78 = arith.select %14, %76, %77 : vector<8x8xi1>, vector<8x8xf32>
    %cst_22 = arith.constant dense<0xFF800000> : vector<8xf32>
    %79 = vector.multi_reduction <maximumf>, %78, %cst_22 [1] : vector<8x8xf32> to vector<8xf32>
    %80 = vector.shape_cast %79 : vector<8xf32> to vector<8x1xf32>
    %81 = vector.broadcast %80 : vector<8x1xf32> to vector<8x8xf32>
    %82 = arith.subf %78, %81 : vector<8x8xf32>
    %83 = math.exp %82 : vector<8x8xf32>
    %cst_23 = arith.constant dense<0.000000e+00> : vector<8xf32>
    %84 = vector.multi_reduction <add>, %83, %cst_23 [1] : vector<8x8xf32> to vector<8xf32>
    %85 = vector.shape_cast %84 : vector<8xf32> to vector<8x1xf32>
    %86 = arith.truncf %83 : vector<8x8xf32> to vector<8x8xbf16>
    %cst_24 = arith.constant dense<0.000000e+00> : vector<8x8xf32>
    %87 = tpu.matmul %86, %55, %cst_24 {dimension_numbers = #tpu.dot_dimension_numbers<[1], [0], [0], [1], [0, 0, 1, 1], [], []>} : vector<8x8xbf16>, vector<8x8xbf16>, vector<8x8xf32> -> vector<8x8xf32>
    %88 = tpu.reciprocal %85 {approx = true} : vector<8x1xf32> -> vector<8x1xf32>
    %89 = vector.broadcast %88 : vector<8x1xf32> to vector<8x8xf32>
    %90 = arith.mulf %87, %89 : vector<8x8xf32>
    %91 = vector.extract_strided_slice %2 {offsets = [0, 16], sizes = [8, 8], strides = [1, 1]} : vector<8x32xf32> to vector<8x8xf32>
    %92 = vector.extract_strided_slice %5 {offsets = [0, 16], sizes = [8, 8], strides = [1, 1]} : vector<8x32xf32> to vector<8x8xf32>
    %93 = vector.extract_strided_slice %7 {offsets = [0, 16], sizes = [8, 8], strides = [1, 1]} : vector<8x32xbf16> to vector<8x8xbf16>
    %94 = vector.extract_strided_slice %91 {offsets = [0, 0], sizes = [8, 4], strides = [1, 1]} : vector<8x8xf32> to vector<8x4xf32>
    %95 = vector.extract_strided_slice %91 {offsets = [0, 4], sizes = [8, 4], strides = [1, 1]} : vector<8x8xf32> to vector<8x4xf32>
    %96 = vector.extract_strided_slice %92 {offsets = [0, 0], sizes = [8, 4], strides = [1, 1]} : vector<8x8xf32> to vector<8x4xf32>
    %97 = vector.extract_strided_slice %92 {offsets = [0, 4], sizes = [8, 4], strides = [1, 1]} : vector<8x8xf32> to vector<8x4xf32>
    %98 = arith.mulf %94, %8 : vector<8x4xf32>
    %99 = arith.mulf %95, %9 : vector<8x4xf32>
    %100 = arith.subf %98, %99 : vector<8x4xf32>
    %101 = arith.mulf %94, %9 : vector<8x4xf32>
    %102 = arith.mulf %95, %8 : vector<8x4xf32>
    %103 = arith.addf %101, %102 : vector<8x4xf32>
    %104 = tpu.concatenate %100, %103 in 1 : vector<8x4xf32>, vector<8x4xf32> -> vector<8x8xf32>
    %105 = arith.mulf %96, %10 : vector<8x4xf32>
    %106 = arith.mulf %97, %11 : vector<8x4xf32>
    %107 = arith.subf %105, %106 : vector<8x4xf32>
    %108 = arith.mulf %96, %11 : vector<8x4xf32>
    %109 = arith.mulf %97, %10 : vector<8x4xf32>
    %110 = arith.addf %108, %109 : vector<8x4xf32>
    %111 = tpu.concatenate %107, %110 in 1 : vector<8x4xf32>, vector<8x4xf32> -> vector<8x8xf32>
    %112 = arith.truncf %104 : vector<8x8xf32> to vector<8x8xbf16>
    %113 = arith.truncf %111 : vector<8x8xf32> to vector<8x8xbf16>
    %cst_25 = arith.constant dense<0.000000e+00> : vector<8x8xf32>
    %114 = tpu.matmul %112, %113, %cst_25 {dimension_numbers = #tpu.dot_dimension_numbers<[1], [1], [0], [0], [0, 0, 1, 0], [], []>} : vector<8x8xbf16>, vector<8x8xbf16>, vector<8x8xf32> -> vector<8x8xf32>
    %cst_26 = arith.constant -1.000000e+30 : f32
    %115 = vector.broadcast %cst_26 : f32 to vector<8x8xf32>
    %116 = arith.select %14, %114, %115 : vector<8x8xi1>, vector<8x8xf32>
    %cst_27 = arith.constant dense<0xFF800000> : vector<8xf32>
    %117 = vector.multi_reduction <maximumf>, %116, %cst_27 [1] : vector<8x8xf32> to vector<8xf32>
    %118 = vector.shape_cast %117 : vector<8xf32> to vector<8x1xf32>
    %119 = vector.broadcast %118 : vector<8x1xf32> to vector<8x8xf32>
    %120 = arith.subf %116, %119 : vector<8x8xf32>
    %121 = math.exp %120 : vector<8x8xf32>
    %cst_28 = arith.constant dense<0.000000e+00> : vector<8xf32>
    %122 = vector.multi_reduction <add>, %121, %cst_28 [1] : vector<8x8xf32> to vector<8xf32>
    %123 = vector.shape_cast %122 : vector<8xf32> to vector<8x1xf32>
    %124 = arith.truncf %121 : vector<8x8xf32> to vector<8x8xbf16>
    %cst_29 = arith.constant dense<0.000000e+00> : vector<8x8xf32>
    %125 = tpu.matmul %124, %93, %cst_29 {dimension_numbers = #tpu.dot_dimension_numbers<[1], [0], [0], [1], [0, 0, 1, 1], [], []>} : vector<8x8xbf16>, vector<8x8xbf16>, vector<8x8xf32> -> vector<8x8xf32>
    %126 = tpu.reciprocal %123 {approx = true} : vector<8x1xf32> -> vector<8x1xf32>
    %127 = vector.broadcast %126 : vector<8x1xf32> to vector<8x8xf32>
    %128 = arith.mulf %125, %127 : vector<8x8xf32>
    %129 = vector.extract_strided_slice %2 {offsets = [0, 24], sizes = [8, 8], strides = [1, 1]} : vector<8x32xf32> to vector<8x8xf32>
    %130 = vector.extract_strided_slice %5 {offsets = [0, 24], sizes = [8, 8], strides = [1, 1]} : vector<8x32xf32> to vector<8x8xf32>
    %131 = vector.extract_strided_slice %7 {offsets = [0, 24], sizes = [8, 8], strides = [1, 1]} : vector<8x32xbf16> to vector<8x8xbf16>
    %132 = vector.extract_strided_slice %129 {offsets = [0, 0], sizes = [8, 4], strides = [1, 1]} : vector<8x8xf32> to vector<8x4xf32>
    %133 = vector.extract_strided_slice %129 {offsets = [0, 4], sizes = [8, 4], strides = [1, 1]} : vector<8x8xf32> to vector<8x4xf32>
    %134 = vector.extract_strided_slice %130 {offsets = [0, 0], sizes = [8, 4], strides = [1, 1]} : vector<8x8xf32> to vector<8x4xf32>
    %135 = vector.extract_strided_slice %130 {offsets = [0, 4], sizes = [8, 4], strides = [1, 1]} : vector<8x8xf32> to vector<8x4xf32>
    %136 = arith.mulf %132, %8 : vector<8x4xf32>
    %137 = arith.mulf %133, %9 : vector<8x4xf32>
    %138 = arith.subf %136, %137 : vector<8x4xf32>
    %139 = arith.mulf %132, %9 : vector<8x4xf32>
    %140 = arith.mulf %133, %8 : vector<8x4xf32>
    %141 = arith.addf %139, %140 : vector<8x4xf32>
    %142 = tpu.concatenate %138, %141 in 1 : vector<8x4xf32>, vector<8x4xf32> -> vector<8x8xf32>
    %143 = arith.mulf %134, %10 : vector<8x4xf32>
    %144 = arith.mulf %135, %11 : vector<8x4xf32>
    %145 = arith.subf %143, %144 : vector<8x4xf32>
    %146 = arith.mulf %134, %11 : vector<8x4xf32>
    %147 = arith.mulf %135, %10 : vector<8x4xf32>
    %148 = arith.addf %146, %147 : vector<8x4xf32>
    %149 = tpu.concatenate %145, %148 in 1 : vector<8x4xf32>, vector<8x4xf32> -> vector<8x8xf32>
    %150 = arith.truncf %142 : vector<8x8xf32> to vector<8x8xbf16>
    %151 = arith.truncf %149 : vector<8x8xf32> to vector<8x8xbf16>
    %cst_30 = arith.constant dense<0.000000e+00> : vector<8x8xf32>
    %152 = tpu.matmul %150, %151, %cst_30 {dimension_numbers = #tpu.dot_dimension_numbers<[1], [1], [0], [0], [0, 0, 1, 0], [], []>} : vector<8x8xbf16>, vector<8x8xbf16>, vector<8x8xf32> -> vector<8x8xf32>
    %cst_31 = arith.constant -1.000000e+30 : f32
    %153 = vector.broadcast %cst_31 : f32 to vector<8x8xf32>
    %154 = arith.select %14, %152, %153 : vector<8x8xi1>, vector<8x8xf32>
    %cst_32 = arith.constant dense<0xFF800000> : vector<8xf32>
    %155 = vector.multi_reduction <maximumf>, %154, %cst_32 [1] : vector<8x8xf32> to vector<8xf32>
    %156 = vector.shape_cast %155 : vector<8xf32> to vector<8x1xf32>
    %157 = vector.broadcast %156 : vector<8x1xf32> to vector<8x8xf32>
    %158 = arith.subf %154, %157 : vector<8x8xf32>
    %159 = math.exp %158 : vector<8x8xf32>
    %cst_33 = arith.constant dense<0.000000e+00> : vector<8xf32>
    %160 = vector.multi_reduction <add>, %159, %cst_33 [1] : vector<8x8xf32> to vector<8xf32>
    %161 = vector.shape_cast %160 : vector<8xf32> to vector<8x1xf32>
    %162 = arith.truncf %159 : vector<8x8xf32> to vector<8x8xbf16>
    %cst_34 = arith.constant dense<0.000000e+00> : vector<8x8xf32>
    %163 = tpu.matmul %162, %131, %cst_34 {dimension_numbers = #tpu.dot_dimension_numbers<[1], [0], [0], [1], [0, 0, 1, 1], [], []>} : vector<8x8xbf16>, vector<8x8xbf16>, vector<8x8xf32> -> vector<8x8xf32>
    %164 = tpu.reciprocal %161 {approx = true} : vector<8x1xf32> -> vector<8x1xf32>
    %165 = vector.broadcast %164 : vector<8x1xf32> to vector<8x8xf32>
    %166 = arith.mulf %163, %165 : vector<8x8xf32>
    %167 = tpu.concatenate %52, %90, %128, %166 in 1 : vector<8x8xf32>, vector<8x8xf32>, vector<8x8xf32>, vector<8x8xf32> -> vector<8x32xf32>
    %168 = arith.truncf %167 : vector<8x32xf32> to vector<8x32xbf16>
    %c0_35 = arith.constant 0 : index
    %c0_36 = arith.constant 0 : index
    %c0_37 = arith.constant 0 : index
    %169 = vector.load %arg9[%c0_35, %c0_36, %c0_37] : memref<1x8x32xbf16, #tpu.memory_space<vmem>>, vector<1x8x32xbf16>
    %170 = vector.shape_cast %169 : vector<1x8x32xbf16> to vector<8x32xbf16>
    %171 = vector.shape_cast %168 : vector<8x32xbf16> to vector<1x8x32xbf16>
    tpu.vector_store %arg9[%c0_35, %c0_36, %c0_37], %171 {strides = array<i32>} : memref<1x8x32xbf16, #tpu.memory_space<vmem>>, vector<1x8x32xbf16>,
    return
  }
  func.func @transform_0(%arg0: i32, %arg1: i32) -> (i32, i32, i32) {
    %c0_i32 = arith.constant 0 : i32
    %c0_i32_0 = arith.constant 0 : i32
    return %arg1, %arg0, %c0_i32 : i32, i32, i32
  }
  func.func @transform_1(%arg0: i32, %arg1: i32) -> (i32, i32, i32) {
    %c1_i32 = arith.constant 1 : i32
    %0 = arith.addi %c1_i32, %arg1 : i32
    %c0_i32 = arith.constant 0 : i32
    %c0_i32_0 = arith.constant 0 : i32
    return %0, %arg0, %c0_i32 : i32, i32, i32
  }
  func.func @transform_2(%arg0: i32, %arg1: i32) -> (i32, i32, i32) {
    %c2_i32 = arith.constant 2 : i32
    %0 = arith.addi %c2_i32, %arg1 : i32
    %c0_i32 = arith.constant 0 : i32
    %c0_i32_0 = arith.constant 0 : i32
    return %0, %arg0, %c0_i32 : i32, i32, i32
  }
  func.func @transform_3(%arg0: i32, %arg1: i32) -> (i32, i32) {
    %c0_i32 = arith.constant 0 : i32
    %c0_i32_0 = arith.constant 0 : i32
    %c0_i32_1 = arith.constant 0 : i32
    return %c0_i32, %c0_i32_0 : i32, i32
  }
  func.func @transform_4(%arg0: i32, %arg1: i32) -> (i32, i32) {
    %c0_i32 = arith.constant 0 : i32
    %c0_i32_0 = arith.constant 0 : i32
    %c0_i32_1 = arith.constant 0 : i32
    return %c0_i32, %c0_i32_0 : i32, i32
  }
  func.func @transform_5(%arg0: i32, %arg1: i32) -> (i32, i32) {
    %c0_i32 = arith.constant 0 : i32
    %c0_i32_0 = arith.constant 0 : i32
    %c0_i32_1 = arith.constant 0 : i32
    return %c0_i32, %c0_i32_0 : i32, i32
  }
  func.func @transform_6(%arg0: i32, %arg1: i32) -> (i32, i32) {
    %c0_i32 = arith.constant 0 : i32
    %c0_i32_0 = arith.constant 0 : i32
    %c0_i32_1 = arith.constant 0 : i32
    return %c0_i32, %c0_i32_0 : i32, i32
  }
  func.func @transform_7(%arg0: i32, %arg1: i32) -> (i32, i32, i32) {
    %c0_i32 = arith.constant 0 : i32
    %c0_i32_0 = arith.constant 0 : i32
    return %arg1, %arg0, %c0_i32 : i32, i32, i32
  }
}

module attributes {stable_mosaic.version = 11 : i64} {
  func.func @_ffn_kernel(%arg0: i32, %arg1: i32, %arg2: memref<16x32xf32, #tpu.memory_space<vmem>>, %arg3: memref<1x32xf32, #tpu.memory_space<vmem>>, %arg4: memref<32x128xbf16, #tpu.memory_space<vmem>>, %arg5: memref<32x128xbf16, #tpu.memory_space<vmem>>, %arg6: memref<128x32xbf16, #tpu.memory_space<vmem>>, %arg7: memref<16x32xf32, #tpu.memory_space<vmem>>, %arg8: memref<16x32xbf16, #tpu.memory_space<vmem>>, %arg9: memref<16x32xf32, #tpu.memory_space<vmem>>) attributes {dimension_semantics = [#tpu.dimension_semantics<parallel>, #tpu.dimension_semantics<arbitrary>], iteration_bounds = array<i64: 1, 1>, scalar_prefetch = 0 : i64, scratch_operands = 2 : i64, tpu.core_type = #tpu.core_type<tc>, window_params = [{transform_indices = @transform_0, window_bounds = array<i64: 16, 32>}, {pipeline_mode = #tpu.pipeline_mode<synchronous>, transform_indices = @transform_1, window_bounds = array<i64: 1, 32>}, {transform_indices = @transform_2, window_bounds = array<i64: 32, 128>}, {transform_indices = @transform_3, window_bounds = array<i64: 32, 128>}, {transform_indices = @transform_4, window_bounds = array<i64: 128, 32>}, {transform_indices = @transform_5, window_bounds = array<i64: 16, 32>}]} {
    %c0_i32 = arith.constant 0 : i32
    %0 = arith.cmpi eq, %arg1, %c0_i32 : i32
    %1 = arith.extui %0 : i1 to i32
    %c0_i32_0 = arith.constant 0 : i32
    %2 = arith.cmpi ne, %1, %c0_i32_0 : i32
    scf.if %2 {
      %c0_17 = arith.constant 0 : index
      %c0_18 = arith.constant 0 : index
      %24 = vector.load %arg2[%c0_17, %c0_18] : memref<16x32xf32, #tpu.memory_space<vmem>>, vector<16x32xf32>
      %25 = arith.mulf %24, %24 : vector<16x32xf32>
      %cst_19 = arith.constant dense<0.000000e+00> : vector<16xf32>
      %26 = vector.multi_reduction <add>, %25, %cst_19 [1] : vector<16x32xf32> to vector<16xf32>
      %27 = vector.shape_cast %26 : vector<16xf32> to vector<16x1xf32>
      %cst_20 = arith.constant 3.200000e+01 : f32
      %28 = vector.broadcast %cst_20 : f32 to vector<16x1xf32>
      %29 = arith.divf %27, %28 : vector<16x1xf32>
      %cst_21 = arith.constant 9.99999974E-6 : f32
      %30 = vector.broadcast %cst_21 : f32 to vector<16x1xf32>
      %31 = arith.addf %29, %30 : vector<16x1xf32>
      %32 = math.rsqrt %31 : vector<16x1xf32>
      %33 = vector.broadcast %32 : vector<16x1xf32> to vector<16x32xf32>
      %34 = arith.mulf %24, %33 : vector<16x32xf32>
      %c0_22 = arith.constant 0 : index
      %c0_23 = arith.constant 0 : index
      %35 = vector.load %arg3[%c0_22, %c0_23] : memref<1x32xf32, #tpu.memory_space<vmem>>, vector<1x32xf32>
      %36 = vector.broadcast %35 : vector<1x32xf32> to vector<16x32xf32>
      %37 = arith.mulf %34, %36 : vector<16x32xf32>
      %38 = arith.truncf %37 : vector<16x32xf32> to vector<16x32xbf16>
      %c0_24 = arith.constant 0 : index
      %c0_25 = arith.constant 0 : index
      %39 = vector.load %arg8[%c0_24, %c0_25] : memref<16x32xbf16, #tpu.memory_space<vmem>>, vector<16x32xbf16>
      tpu.vector_store %arg8[%c0_24, %c0_25], %38 {strides = array<i32>} : memref<16x32xbf16, #tpu.memory_space<vmem>>, vector<16x32xbf16>,
      %cst_26 = arith.constant 0.000000e+00 : f32
      %40 = vector.broadcast %cst_26 : f32 to vector<16x32xf32>
      %c0_27 = arith.constant 0 : index
      %c0_28 = arith.constant 0 : index
      %41 = vector.load %arg9[%c0_27, %c0_28] : memref<16x32xf32, #tpu.memory_space<vmem>>, vector<16x32xf32>
      tpu.vector_store %arg9[%c0_27, %c0_28], %40 {strides = array<i32>} : memref<16x32xf32, #tpu.memory_space<vmem>>, vector<16x32xf32>,
    } else {
    }
    %c0 = arith.constant 0 : index
    %c0_1 = arith.constant 0 : index
    %3 = vector.load %arg8[%c0, %c0_1] : memref<16x32xbf16, #tpu.memory_space<vmem>>, vector<16x32xbf16>
    %c0_2 = arith.constant 0 : index
    %c0_3 = arith.constant 0 : index
    %4 = vector.load %arg4[%c0_2, %c0_3] : memref<32x128xbf16, #tpu.memory_space<vmem>>, vector<32x128xbf16>
    %cst = arith.constant dense<0.000000e+00> : vector<16x128xf32>
    %5 = tpu.matmul %3, %4, %cst {dimension_numbers = #tpu.dot_dimension_numbers<[1], [0], [0], [1], [0, 0, 1, 1], [], []>} : vector<16x32xbf16>, vector<32x128xbf16>, vector<16x128xf32> -> vector<16x128xf32>
    %c0_4 = arith.constant 0 : index
    %c0_5 = arith.constant 0 : index
    %6 = vector.load %arg5[%c0_4, %c0_5] : memref<32x128xbf16, #tpu.memory_space<vmem>>, vector<32x128xbf16>
    %cst_6 = arith.constant dense<0.000000e+00> : vector<16x128xf32>
    %7 = tpu.matmul %3, %6, %cst_6 {dimension_numbers = #tpu.dot_dimension_numbers<[1], [0], [0], [1], [0, 0, 1, 1], [], []>} : vector<16x32xbf16>, vector<32x128xbf16>, vector<16x128xf32> -> vector<16x128xf32>
    %8 = arith.negf %5 : vector<16x128xf32>
    %9 = math.exp %8 : vector<16x128xf32>
    %cst_7 = arith.constant 1.000000e+00 : f32
    %10 = vector.broadcast %cst_7 : f32 to vector<16x128xf32>
    %11 = arith.addf %10, %9 : vector<16x128xf32>
    %12 = arith.divf %10, %11 : vector<16x128xf32>
    %13 = arith.mulf %5, %12 : vector<16x128xf32>
    %14 = arith.mulf %13, %7 : vector<16x128xf32>
    %c0_8 = arith.constant 0 : index
    %c0_9 = arith.constant 0 : index
    %15 = vector.load %arg9[%c0_8, %c0_9] : memref<16x32xf32, #tpu.memory_space<vmem>>, vector<16x32xf32>
    %16 = arith.truncf %14 : vector<16x128xf32> to vector<16x128xbf16>
    %c0_10 = arith.constant 0 : index
    %c0_11 = arith.constant 0 : index
    %17 = vector.load %arg6[%c0_10, %c0_11] : memref<128x32xbf16, #tpu.memory_space<vmem>>, vector<128x32xbf16>
    %cst_12 = arith.constant dense<0.000000e+00> : vector<16x32xf32>
    %18 = tpu.matmul %16, %17, %cst_12 {dimension_numbers = #tpu.dot_dimension_numbers<[1], [0], [0], [1], [0, 0, 1, 1], [], []>} : vector<16x128xbf16>, vector<128x32xbf16>, vector<16x32xf32> -> vector<16x32xf32>
    %19 = arith.addf %15, %18 : vector<16x32xf32>
    %c0_13 = arith.constant 0 : index
    %c0_14 = arith.constant 0 : index
    %20 = vector.load %arg9[%c0_13, %c0_14] : memref<16x32xf32, #tpu.memory_space<vmem>>, vector<16x32xf32>
    tpu.vector_store %arg9[%c0_13, %c0_14], %19 {strides = array<i32>} : memref<16x32xf32, #tpu.memory_space<vmem>>, vector<16x32xf32>,
    %c0_i32_15 = arith.constant 0 : i32
    %21 = arith.cmpi eq, %arg1, %c0_i32_15 : i32
    %22 = arith.extui %21 : i1 to i32
    %c0_i32_16 = arith.constant 0 : i32
    %23 = arith.cmpi ne, %22, %c0_i32_16 : i32
    scf.if %23 {
      %c0_17 = arith.constant 0 : index
      %c0_18 = arith.constant 0 : index
      %24 = vector.load %arg2[%c0_17, %c0_18] : memref<16x32xf32, #tpu.memory_space<vmem>>, vector<16x32xf32>
      %c0_19 = arith.constant 0 : index
      %c0_20 = arith.constant 0 : index
      %25 = vector.load %arg9[%c0_19, %c0_20] : memref<16x32xf32, #tpu.memory_space<vmem>>, vector<16x32xf32>
      %26 = arith.addf %24, %25 : vector<16x32xf32>
      %c0_21 = arith.constant 0 : index
      %c0_22 = arith.constant 0 : index
      %27 = vector.load %arg7[%c0_21, %c0_22] : memref<16x32xf32, #tpu.memory_space<vmem>>, vector<16x32xf32>
      tpu.vector_store %arg7[%c0_21, %c0_22], %26 {strides = array<i32>} : memref<16x32xf32, #tpu.memory_space<vmem>>, vector<16x32xf32>,
    } else {
    }
    return
  }
  func.func @transform_0(%arg0: i32, %arg1: i32) -> (i32, i32) {
    %c0_i32 = arith.constant 0 : i32
    %c0_i32_0 = arith.constant 0 : i32
    return %arg0, %c0_i32 : i32, i32
  }
  func.func @transform_1(%arg0: i32, %arg1: i32) -> (i32, i32) {
    %c0_i32 = arith.constant 0 : i32
    %c0_i32_0 = arith.constant 0 : i32
    %c0_i32_1 = arith.constant 0 : i32
    return %c0_i32, %c0_i32_0 : i32, i32
  }
  func.func @transform_2(%arg0: i32, %arg1: i32) -> (i32, i32) {
    %c0_i32 = arith.constant 0 : i32
    %c0_i32_0 = arith.constant 0 : i32
    return %c0_i32, %arg1 : i32, i32
  }
  func.func @transform_3(%arg0: i32, %arg1: i32) -> (i32, i32) {
    %c0_i32 = arith.constant 0 : i32
    %c0_i32_0 = arith.constant 0 : i32
    return %c0_i32, %arg1 : i32, i32
  }
  func.func @transform_4(%arg0: i32, %arg1: i32) -> (i32, i32) {
    %c0_i32 = arith.constant 0 : i32
    %c0_i32_0 = arith.constant 0 : i32
    return %arg1, %c0_i32 : i32, i32
  }
  func.func @transform_5(%arg0: i32, %arg1: i32) -> (i32, i32) {
    %c0_i32 = arith.constant 0 : i32
    %c0_i32_0 = arith.constant 0 : i32
    return %arg0, %c0_i32 : i32, i32
  }
}

</mosaic_0001>

<bundles_post_ra>
// kernel: transformer_block.4
= control target key start
LH: loop header
LB: loop body
LE: loop exit
PB: predicated region body
PF: predicated region fallthrough
CT: control target
= control target key end

     0   :  { %8 = vsyncpa [#allocation4], 0  ;;  %s1087_s0 = inlined_call_operand.hbm [shape: f32[16,32], index: 0, kind: input, shape index: {}]   ;;  %s1088_s1 = inlined_call_operand.hbm [shape: f32[1,32], index: 1, kind: input, shape index: {}]   ;;  %s1089_s2 = inlined_call_operand.hbm [shape: bf16[3,32,32], index: 2, kind: input, shape index: {}]   ;;  %s1090_s3 = inlined_call_operand.hbm [shape: bf16[3,16,32], index: 3, kind: output, shape index: {}]  }
   0x1   :  { %9 = vsyncpa [#allocation7], 0 }
   0x2   :  { %10 = vsyncpa [#allocation5], 0 }
   0x3   :  { %12 = vsyncpa [#allocation5 + $0x1], 0  ;;  %s816_s12 = smov 0   ;;  %s818_s13 = smov 0  }
   0x4   :  { %s820_s14 = smov 0   ;;  %s822_s15 = smov 0  }
   0x5   :  { %s824_s16 = smov 0   ;;  %s826_s17 = smov 0  }
   0x6 LB: > { %s847_s18 = sadd.s32 4294967295, %s782_s17   ;;  %s469_s19 = sadd.s32 4294967294, %s782_s17   ;;  %s782_s17 = sphi %s826_s17, %s18_s17   ;;  %s778_s16 = sphi %s824_s16, %s1112_s16   ;;  %s774_s15 = sphi %s822_s15, %s1111_s15   ;;  %s770_s14 = sphi %s820_s14, %s1110_s14   ;;  %s766_s13 = sphi %s818_s13, %s1109_s13   ;;  %s762_s12 = sphi %s816_s12, %s1108_s12  }
   0x7   : > { %p91_p0 = scmp.ne.s32.totalorder %s770_s14, %s766_s13  ;;  %p92_p1 = scmp.eq.s32.totalorder %s782_s17, 0 }
   0x8   : > { %p97_p2 = scmp.ne.s32.totalorder %s766_s13, %s762_s12  ;;  %p1091_p3 = scmp.eq.s32.totalorder %s847_s18, 0 }
   0x9   : > { %p856_p4 = por %p92_p1, %p91_p0  ;;  %p123_p5 = scmp.eq.s32.totalorder %s847_s18, 2 }
   0xa   : > { %p863_p6 = por %p1091_p3, %p97_p2  ;;  %p129_p7 = scmp.eq.s32.totalorder %s469_s19, 2 }
   0xb   : > { %p867_p8 = por %p123_p5, %p91_p0  ;;  %p470_p9 = scmp.ge.s32.totalorder %s782_s17, 1 }
   0xc   : > { %s1095_s21 = scalar_select %p863_p6, 1, 0 }
   0xd   : > { %s1096_s22 = scalar_select %p867_p8, 1, 0 }
   0xe   : > { %p872_p10 = por %p129_p7, %p97_p2  ;;  %p136_p11 = scmp.lt.s32.totalorder %s782_s17, 4 }
   0xf   : > { %s784_s25 = smov [#allocation3]   ;;  %p538_p0 = scmp.lt.s32.totalorder %s782_s17, 3 }
  0x10   : > { %s1097_s23 = scalar_select %p872_p10, 1, 0 }
  0x11   : > { %p877_p12 = pnand %p470_p9, %p136_p11  ;;  %s151_s26 = sshll.u32 %s784_s25, 4  ;;  %s881_s26 = int_to_ptr.vmem [resolvable:$true] %s151_s26 }
  0x12   : > { %p894_p2 = pnand %p538_p0, %p856_p4  ;;  %s785_s29 = smov [#allocation6]  }
  0x13   : > { %p521_p13 = pneg %p877_p12  ;;  %s165_s30 = sshll.u32 %s785_s29, 4  ;;  %s898_s30 = int_to_ptr.vmem [resolvable:$true] %s165_s30 }
  0x14   : > { %s606_s6 = scalar_lea.hbm %s1087_s0, 256 }
  0x15   : > { %p888_p1 = pnand %p521_p13, %p1091_p3  ;;  %p607_p5 = scmp.ne.s32.totalorder %s1087_s0, %s606_s6 }
  0x16   : > { %p613_p11 = scmp.lt.u32.totalorder %s606_s6, %s1087_s0 }
  0x17   : > { %p608_p7 = pneg %p888_p1 }
  0x19   : > { %p609_p4 = pnand %p608_p7, %p607_p5 }
  0x1b   : > { %p610_p9 = pneg %p609_p4 }
  0x1d   : > { %p615_p13 = pnand %p613_p11, %p610_p9 }
  0x1f   : > { %618 = shalt.err (!%p615_p13)
}
  0x20   : > { %s619_s11 = scalar_lea.vmem %s881_s26, 256  ;;  %p627_p8 = scmp.lt.s32.totalorder %s881_s26, %s881_s26 }
  0x21   : > { %p620_p0 = scmp.ne.s32.totalorder %s881_s26, %s619_s11  ;;  %p628_p5 = scmp.lt.s32.totalorder %s619_s11, %s619_s11 }
  0x23   : > { %p622_p3 = pnand %p620_p0, %p608_p7  ;;  %p629_p4 = por %p628_p5, %p627_p8 }
  0x25   : > { %p623_p10 = pneg %p622_p3 }
  0x27   : > { %p630_p6 = pnand %p629_p4, %p623_p10 }
  0x29   : > { %633 = shalt.err (!%p630_p6)
}
  0x2a   : > { %s786_s19 = smov 128   ;;  %s787_s20 = smov 8  }
  0x2b   : > { %524 = dma.hbm_to_vmem [thread:$0]  (!%p888_p1), %s1087_s0, 256, %s881_s26, [#allocation4], %s786_s19, %s786_s19, %s787_s20  }
  0x2c   : > { %s634_s6 = scalar_lea.hbm %s1088_s1, 16 }
  0x2d   : > { %p635_p3 = scmp.ne.s32.totalorder %s1088_s1, %s634_s6  ;;  %p641_p10 = scmp.lt.u32.totalorder %s634_s6, %s1088_s1 }
  0x2f   : > { %p637_p6 = pnand %p635_p3, %p608_p7 }
  0x31   : > { %p638_p8 = pneg %p637_p6 }
  0x33   : > { %p643_p9 = pnand %p641_p10, %p638_p8 }
  0x35   : > { %646 = shalt.err (!%p643_p9)
}
  0x36   : > { %s647_s26 = scalar_lea.vmem %s898_s30, 16  ;;  %s654_s11 = scalar_lea.vmem %s898_s30, 32 }
  0x37   : > { %p648_p11 = scmp.ne.s32.totalorder %s898_s30, %s647_s26  ;;  %p655_p5 = scmp.lt.s32.totalorder %s898_s30, %s898_s30 }
  0x38   : > { %p656_p4 = scmp.lt.s32.totalorder %s654_s11, %s647_s26 }
  0x39   : > { %p650_p13 = pnand %p648_p11, %p608_p7 }
  0x3a   : > { %p657_p3 = por %p656_p4, %p655_p5 }
  0x3b   : > { %p651_p0 = pneg %p650_p13 }
  0x3d   : > { %p658_p6 = pnand %p657_p3, %p651_p0 }
  0x3f   : > { %661 = shalt.err (!%p658_p6)
}
  0x40   : > { %527 = dma.hbm_to_vmem [thread:$0]  (!%p888_p1), %s1088_s1, 16, %s898_s30, [#allocation7]  }
  0x41   : > { %s84_s25 = sadd.s32 1, %s770_s14  ;;  %s27_s29 = sadd.s32 1, %s778_s16 }
  0x42   : > { %s176_s4 = sand.u32 1, %s782_s17   ;;  %p28_p7 = scmp.ge.s32.totalorder %s27_s29, 3 }
  0x43   : > { %s178_s5 = sand.u32 1, %s770_s14   ;;  %s494_s27 = sshll.u32 %s778_s16, 8 }
  0x44   : > { %s1114_s29 = smov (%p28_p7, %s27_s29), 0  ;;  %s474_s6 = sshll.u32 %s178_s5, 4 }
  0x45   : > { %s963_s9 = scalar_lea.hbm %s1089_s2, %s494_s27  ;;  %s81_s30 = ssub.s32 %s778_s16, %s1114_s29 }
  0x46   : > { %p82_p1 = scmp.eq.s32.totalorder %s81_s30, 0  ;;  %s180_s10 = scalar_lea.vmem [#allocation8], %s474_s6 }
  0x47   : > { %s187_s26 = sshll.u32 %s180_s10, 4  ;;  %s972_s19 = scalar_lea.sflag [#allocation4], %s176_s4  ;;  %s967_s26 = int_to_ptr.vmem [resolvable:$true] %s187_s26 }
  0x48   : > { %s970_s11 = scalar_select %p82_p1, %s770_s14, %s84_s25  }
  0x49   : > { %s662_s20 = scalar_lea.hbm %s963_s9, 256  ;;  %p664_p10 = pneg %p894_p2 }
  0x4a   : > { %p663_p8 = scmp.ne.s32.totalorder %s963_s9, %s662_s20  ;;  %s667_s7 = scalar_lea.hbm %s1089_s2, 768 }
  0x4b   : > { %p668_p13 = scmp.lt.u32.totalorder %s963_s9, %s1089_s2  ;;  %p669_p0 = scmp.lt.u32.totalorder %s667_s7, %s662_s20 }
  0x4c   : > { %p665_p9 = pnand %p664_p10, %p663_p8  ;;  %p671_p4 = scmp.lt.u32.totalorder %s662_s20, %s963_s9 }
  0x4d   : > { %p670_p5 = por %p669_p0, %p668_p13 }
  0x4e   : > { %p666_p11 = pneg %p665_p9 }
  0x4f   : > { %p672_p3 = por %p671_p4, %p670_p5 }
  0x51   : > { %p673_p6 = pnand %p672_p3, %p666_p11 }
  0x53   : > { %676 = shalt.err (!%p673_p6)
}
  0x54   : > { %s677_s25 = scalar_lea.vmem %s967_s26, 256  ;;  %s788_s4 = smov [#allocation8]  }
  0x55   : > { %p678_p7 = scmp.ne.s32.totalorder %s967_s26, %s677_s25  ;;  %s682_s30 = sshll.u32 %s788_s4, 4  ;;  %s683_s30 = int_to_ptr.vmem [resolvable:$false] %s682_s30 }
  0x56   : > { %s684_s10 = scalar_lea.vmem %s683_s30, 512  ;;  %p685_p9 = scmp.lt.s32.totalorder %s967_s26, %s683_s30 }
  0x57   : > { %p680_p1 = pnand %p678_p7, %p664_p10  ;;  %p686_p13 = scmp.lt.s32.totalorder %s684_s10, %s677_s25 }
  0x59   : > { %p681_p8 = pneg %p680_p1  ;;  %p687_p0 = por %p686_p13, %p685_p9 }
  0x5b   : > { %p688_p5 = pnand %p687_p0, %p681_p8 }
  0x5d   : > { %691 = shalt.err (!%p688_p5)
}
  0x5e   : > { %s789_s20 = smov 64   ;;  %s790_s5 = smov 4  }
  0x5f   : > { %531 = dma.hbm_to_vmem [thread:$0]  (!%p894_p2), %s963_s9, 256, %s967_s26, %s972_s19, %s789_s20, %s789_s20, %s790_s5  }
  0x60   : > { %199 = sbr.rel (%p877_p12) target bundleno = 525 (0x20d), region = 32  ;;  %p1101_p10 = scmp.eq.s32.totalorder (!%p877_p12), %s847_s18, 0 }
  0x67   : > { %745 = dma.done.wait (%p1101_p10), [#allocation4], 256   ;;  %p1102_p11 = pmov %p1101_p10 }
  0x68   : > { %p1103_p4 = pmov %p1101_p10 }
  0x69   : > { %747 = vsyncadd (%p1102_p11), [#allocation4], 4294967040 }
  0x6a   : > { %749 = dma.done.wait (%p1103_p4), [#allocation7], 16   ;;  %p1104_p3 = pmov %p1103_p4 }
  0x6b   : > { %s209_s28 = sand.u32 1, %s847_s18   ;;  %s1012_s9 = sand.u32 1, %s766_s13  }
  0x6c   : > { %751 = vsyncadd (%p1104_p3), [#allocation7], 4294967280  ;;  %s480_s24 = sshll.u32 %s1012_s9, 4  ;;  %s210_s26 = scalar_lea.sflag [#allocation4], %s209_s28 }
  0x6d   : > { %s1015_s19 = scalar_lea.vmem [#allocation8], %s480_s24  ;;  %p1105_p12 = scmp.ne.s32.totalorder %s1095_s21, 0 }
  0x6f   : > { %753 = dma.done.wait (%p1105_p12), %s210_s26, 256  }
  0x70   : > { %755 = vsyncadd (%p1105_p12), %s210_s26, 4294967040  ;;  %s481_s27 = sshll.u32 %s1012_s9, 3  ;;  %p482_p2 = scmp.ne.s32.totalorder %s774_s15, 0 }
  0x71   : > { %s1022_s7 = scalar_lea.vmem [#allocation9], %s481_s27  ;;  %v243_v0 = vld [vmem:[#allocation3] sm:$0xff] (!%p482_p2)  ;;  %vm247_vm0 = vcmask (!%p482_p2), 261120   ;;  %v244_v1 = vld [vmem:[#allocation3 + $0x8] sm:$0xff] (!%p482_p2)  ;;  %v483_v15 = vld [vmem:[#allocation6] ss:$0 sm:$0xff] (!%p482_p2) }
  0x72   : > { %242 = sbr.rel (%p482_p2) target bundleno = 285 (0x11d), region = 48  ;;  %v245_v2 = vmul.f32 (!%p482_p2), %v243_v0, %v243_v0  ;;  %v246_v3 = vmul.f32 (!%p482_p2), %v244_v1, %v244_v1 }
  0x74   : > { %v248_v4 = vsel (!%p482_p2), %vm247_vm0, %v245_v2, 0.0  ;;  %v251_v5 = vsel (!%p482_p2), %vm247_vm0, %v246_v3, 0.0 }
  0x75   : > { %249 = vadd.xlane.f32.xlu0 (!%p482_p2), %v248_v4 }
  0x79   : > { %252 = vadd.xlane.f32.xlu0 %v251_v5 }
 0x102   : > { %v250_v6 = vpop.xlane.xlu0 %249 }
 0x103   : > { %v255_v7 = vmul.f32 0.03125, %v250_v6 }
 0x105   : > { %v257_v8 = vadd.f32 1e-05, %v255_v7 }
 0x106   : > { %v253_v9 = vpop.xlane.xlu0 %252 }
 0x107   : > { %600 = vrsqrt.f32 %v257_v8  ;;  %v256_v10 = vmul.f32 0.03125, %v253_v9 }
 0x109   : > { %v258_v11 = vadd.f32 1e-05, %v256_v10 }
 0x10b   : > { %602 = vrsqrt.f32 %v258_v11 }
 0x111   : > { %v601_v12 = vpop.eup %600 }
 0x112   : > { %v261_v13 = vmul.f32 %v601_v12, %v243_v0 }
 0x114   : > { %v270_v17 = vmul.f32 %v483_v15, %v261_v13 }
 0x115   : > { %v603_v14 = vpop.eup %602 }
 0x116   : > { %v262_v16 = vmul.f32 %v603_v14, %v244_v1 }
 0x118   : > { %v271_v18 = vmul.f32 %v483_v15, %v262_v16 }
 0x11a   : > { %v272_v19 = vpack.c.bf16 %v271_v18, %v270_v17 }
 0x11c   : > { %273 = vst.msk [vmem:[#allocation2] sm:$0xff] %vm247_vm0, %v272_v19 }
 0x11d PF: > { %v604_v20 = vld [vmem:[%s1015_s19] sm:$0xff]   ;;  %v791_v21 = vmov 0.0   ;;  %v605_v22 = vld [vmem:[%s1015_s19 + $0x8] sm:$0xff]   ;;  %vm792_vm1 = vmmov 0   ;;  %vm291_vm2 = vcmask 261120   ;;  %s497_s18 = sshll.u32 %s774_s15, 7 }
 0x11e   : > { %501 = vmatprep.subr.bf16.mxu0 %v791_v21  ;;  %505 = vmatprep.mubr.msk.bf16.mxu0 %vm792_vm1, %v791_v21  ;;  %s363_s21 = sshll.u32 %s1022_s7, 4  ;;  %vm344_vm3 = vcmask 257024   ;;  %s1035_s25 = scalar_lea.hbm %s1090_s3, %s497_s18  ;;  %s1037_s21 = int_to_ptr.vmem [resolvable:$true] %s363_s21 }
 0x11f   : > { %502 = vmatpush3.bf16.msra.mxu0 %v604_v20  ;;  %s348_s15 = scalar_lea.sflag [#allocation5], %s1012_s9  ;;  %s692_s4 = scalar_lea.vmem %s1037_s21, 128 }
 0x120   : > { %503 = vmatprep.subr.bf16.mxu0 %v791_v21  ;;  %p693_p6 = scmp.ne.s32.totalorder %s1037_s21, %s692_s4  ;;  %p1106_p7 = scmp.ne.s32.totalorder %s1096_s22, 0 }
 0x121   : > { %s793_s30 = smov [#allocation9]  }
 0x122   : > { %p694_p1 = pnand %p693_p6, %p1106_p7  ;;  %s696_s10 = sshll.u32 %s793_s30, 4  ;;  %s697_s10 = int_to_ptr.vmem [resolvable:$false] %s696_s10 }
 0x123   : > { %504 = vmatpush3.bf16.msra.mxu0 %v605_v22  ;;  %v274_v23 = vld [vmem:[#allocation2] sm:$0xff]  ;;  %s698_s20 = scalar_lea.vmem %s697_s10, 256  ;;  %p699_p9 = scmp.lt.s32.totalorder %s1037_s21, %s697_s10 }
 0x124   : > { %p695_p8 = pneg %p694_p1  ;;  %p700_p13 = scmp.lt.s32.totalorder %s698_s20, %s692_s4 }
 0x126   : > { %506 = vmatmul.mubr.msk.bf16.vlgmr.msra.gmra.mrb[0].mxu0 %vm291_vm2, %v274_v23  ;;  %p701_p0 = por %p700_p13, %p699_p9 }
 0x128   : > { %p702_p5 = pnand %p701_p0, %p695_p8 }
 0x1f9   : > { %v329_v24 = vpop.f32.mrb[0].mxu0 }
 0x1fa   : > { %v495_v25 = vpack.c.bf16 %v329_v24, %v329_v24  ;;  %v507_v26 = vpop.f32.mrb[1].mxu0 }
 0x1fb   : > { %v332_v27 = vpop.f32.mrb[2].mxu0 }
 0x1fc   : > { %345 = vst.msk [vmem:[%s1022_s7] sm:$0xf] %vm344_vm3, %v495_v25  ;;  %v496_v28 = vpack.c.bf16 %v332_v27, %v332_v27  ;;  %v508_v29 = vpop.f32.mrb[3].mxu0 }
 0x1fe   : > { %346 = vst.msk [vmem:[%s1022_s7 + $0x4] sm:$0xf] %vm344_vm3, %v496_v28 }
 0x1ff   : > { %705 = shalt.err (!%p702_p5)
}
 0x200   : > { %s706_s5 = scalar_lea.hbm %s1035_s25, 128  ;;  %s710_s26 = scalar_lea.hbm %s1090_s3, 384 }
 0x201   : > { %p707_p10 = scmp.ne.s32.totalorder %s1035_s25, %s706_s5  ;;  %p711_p3 = scmp.lt.u32.totalorder %s1035_s25, %s1090_s3 }
 0x202   : > { %p712_p12 = scmp.lt.u32.totalorder %s710_s26, %s706_s5  ;;  %p714_p6 = scmp.lt.u32.totalorder %s706_s5, %s1035_s25 }
 0x203   : > { %p708_p11 = pnand %p707_p10, %p1106_p7 }
 0x204   : > { %p713_p2 = por %p712_p12, %p711_p3 }
 0x205   : > { %p709_p4 = pneg %p708_p11 }
 0x206   : > { %p715_p1 = por %p714_p6, %p713_p2 }
 0x208   : > { %p716_p8 = pnand %p715_p1, %p709_p4 }
 0x20a   : > { %719 = shalt.err (!%p716_p8)
}
 0x20b   : > { %s794_s7 = smov 64   ;;  %s795_s18 = smov 4  }
 0x20c   : > { %519 = dma.vmem_to_hbm [thread:$0]  (%p1106_p7), %s1037_s21, 128, %s1035_s25, %s348_s15, %s794_s7, %s794_s7, %s795_s18  }
 0x20d PF: > { %p541_p9 = scmp.ge.s32.totalorder %s782_s17, 2  ;;  %s378_s6 = sand.u32 1, %s762_s12  }
 0x20e   : > { %p1107_p13 = scmp.ne.s32.totalorder %s1097_s23, 0  ;;  %s379_s8 = scalar_lea.sflag [#allocation5], %s378_s6 }
 0x210   : > { %p533_p0 = pnand %p541_p9, %p1107_p13 }
 0x212   : > { %757 = dma.done.wait (!%p533_p0), %s379_s8, 128  }
 0x213   : > { %759 = vsyncadd (!%p533_p0), %s379_s8, 4294967168  ;;  %s18_s17 = sadd.s32 1, %s782_s17   ;;  %s1108_s12 = smov %s766_s13 }
 0x214   : > { %p15_p5 = scmp.ge.s32.totalorder %s18_s17, 5   ;;  %s1109_s13 = smov %s770_s14 }
 0x215   : > { %s1110_s14 = smov %s970_s11  ;;  %s1111_s15 = smov %s778_s16 }
 0x216   : > { %s1112_s16 = smov %s1114_s29  ;;  %17 = sbr.rel (!%p15_p5) target bundleno = 6 (0x6), region = 89 }
 0x21d   :  { %384 = vsyncpa [#allocation4], 1 }
 0x21e   :  { %386 = vsyncpa [#allocation4 + $0x1], 1 }
 0x21f   :  { %387 = vsyncpa [#allocation7], 1 }
 0x220   :  { %388 = vsyncpa [#allocation5], 1 }
 0x221   :  { %390 = vsyncpa [#allocation5 + $0x1], 1 }

// kernel: transformer_block.6
= control target key start
LH: loop header
LB: loop body
LE: loop exit
PB: predicated region body
PF: predicated region fallthrough
CT: control target
= control target key end

     0   :  { %8 = vsyncpa [#allocation3], 0  ;;  %s362_s0 = inlined_call_operand.hbm [shape: bf16[1,16,32], index: 0, kind: input, shape index: {}]   ;;  %s363_s1 = inlined_call_operand.hbm [shape: bf16[1,32,32], index: 1, kind: input, shape index: {}]   ;;  %s364_s2 = inlined_call_operand.hbm [shape: f32[16,32], index: 2, kind: input, shape index: {}]   ;;  %s365_s3 = inlined_call_operand.hbm [shape: f32[16,32], index: 3, kind: output, shape index: {}]  }
   0x1   :  { %9 = vsyncpa [#allocation6], 0 }
   0x2   :  { %10 = vsyncpa [#allocation4], 0  ;;  %s271_s12 = smov [#allocation5]   ;;  %s272_s14 = smov [#allocation2]  }
   0x3   :  { %s28_s13 = sshll.u32 %s271_s12, 4  ;;  %s16_s15 = sshll.u32 %s272_s14, 4  ;;  %s29_s13 = int_to_ptr.vmem [resolvable:$true] %s28_s13  ;;  %s301_s15 = int_to_ptr.vmem [resolvable:$true] %s16_s15 }
   0x4   :  { %s177_s18 = scalar_lea.hbm %s363_s1, 256 }
   0x5   :  { %p178_p0 = scmp.ne.s32.totalorder %s363_s1, %s177_s18  ;;  %p181_p1 = scmp.lt.u32.totalorder %s177_s18, %s363_s1 }
   0x7   :  { %p183_p2 = pnand %p181_p1, %p178_p0 }
   0x9   :  { %186 = shalt.err (!%p183_p2)
}
   0xa   :  { %s187_s23 = scalar_lea.vmem %s29_s13, 256  ;;  %p192_p4 = scmp.lt.s32.totalorder %s29_s13, %s29_s13 }
   0xb   :  { %p188_p3 = scmp.ne.s32.totalorder %s29_s13, %s187_s23  ;;  %p193_p5 = scmp.lt.s32.totalorder %s187_s23, %s187_s23 }
   0xd   :  { %p194_p6 = por %p193_p5, %p192_p4 }
   0xf   :  { %p195_p7 = pnand %p194_p6, %p188_p3 }
  0x11   :  { %198 = shalt.err (!%p195_p7)
}
  0x12   :  { %s273_s24 = smov 64   ;;  %s274_s25 = smov 4  }
  0x13   :  { %34 = dma.hbm_to_vmem [thread:$0]  %s363_s1, 256, %s29_s13, [#allocation6], %s273_s24, %s273_s24, %s274_s25  }
  0x14   :  { %s199_s30 = scalar_lea.hbm %s362_s0, 128 }
  0x15   :  { %p200_p8 = scmp.ne.s32.totalorder %s362_s0, %s199_s30  ;;  %p203_p9 = scmp.lt.u32.totalorder %s199_s30, %s362_s0 }
  0x17   :  { %p205_p10 = pnand %p203_p9, %p200_p8 }
  0x19   :  { %208 = shalt.err (!%p205_p10)
}
  0x1a   :  { %s209_s8 = scalar_lea.vmem %s301_s15, 128  ;;  %p214_p12 = scmp.lt.s32.totalorder %s301_s15, %s301_s15 }
  0x1b   :  { %p210_p11 = scmp.ne.s32.totalorder %s301_s15, %s209_s8  ;;  %p215_p13 = scmp.lt.s32.totalorder %s209_s8, %s209_s8 }
  0x1d   :  { %p216_p0 = por %p215_p13, %p214_p12 }
  0x1f   :  { %p217_p1 = pnand %p216_p0, %p210_p11 }
  0x21   :  { %220 = shalt.err (!%p217_p1)
}
  0x22   :  { %22 = dma.hbm_to_vmem [thread:$0]  %s362_s0, 128, %s301_s15, [#allocation3], %s273_s24, %s273_s24, %s274_s25  }
  0x23   :  { %s275_s10 = smov [#allocation7]   ;;  %s221_s14 = scalar_lea.hbm %s364_s2, 256 }
  0x24   :  { %s40_s11 = sshll.u32 %s275_s10, 4  ;;  %p222_p2 = scmp.ne.s32.totalorder %s364_s2, %s221_s14  ;;  %s41_s11 = int_to_ptr.vmem [resolvable:$true] %s40_s11 }
  0x25   :  { %p225_p3 = scmp.lt.u32.totalorder %s221_s14, %s364_s2 }
  0x27   :  { %p227_p4 = pnand %p225_p3, %p222_p2 }
  0x29   :  { %230 = shalt.err (!%p227_p4)
}
  0x2a   :  { %s231_s20 = scalar_lea.vmem %s41_s11, 256  ;;  %p236_p6 = scmp.lt.s32.totalorder %s41_s11, %s41_s11 }
  0x2b   :  { %p232_p5 = scmp.ne.s32.totalorder %s41_s11, %s231_s20  ;;  %p237_p7 = scmp.lt.s32.totalorder %s231_s20, %s231_s20 }
  0x2d   :  { %p238_p8 = por %p237_p7, %p236_p6 }
  0x2f   :  { %p239_p9 = pnand %p238_p8, %p232_p5 }
  0x31   :  { %242 = shalt.err (!%p239_p9)
}
  0x32   :  { %s276_s0 = smov 128   ;;  %s277_s15 = smov 8  }
  0x33   :  { %46 = dma.hbm_to_vmem [thread:$0]  %s364_s2, 256, %s41_s11, [#allocation6], %s276_s0, %s276_s0, %s277_s15  }
  0x34   :  { %265 = dma.done.wait [#allocation3], 128  }
  0x35   :  { %266 = vsyncadd [#allocation3], 4294967168 }
  0x36   :  { %267 = dma.done.wait [#allocation6], 512  }
  0x37   :  { %268 = vsyncadd [#allocation6], 4294966784  ;;  %v278_v0 = vmov 0.0   ;;  %vm279_vm0 = vmmov 0   ;;  %v174_v1 = vld [vmem:[#allocation5] sm:$0xff]   ;;  %v175_v2 = vld [vmem:[#allocation5 + $0x8] sm:$0xff]  }
  0x38   :  { %156 = vmatprep.subr.bf16.mxu0 %v278_v0  ;;  %160 = vmatprep.mubr.msk.bf16.mxu0 %vm279_vm0, %v278_v0  ;;  %v176_v3 = vld [vmem:[#allocation2] sm:$0xff]   ;;  %vm82_vm1 = vcmask 261120   ;;  %v57_v4 = vld [vmem:[#allocation7] sm:$0xff]  ;;  %s280_s2 = smov [#allocation8]  }
  0x39   :  { %157 = vmatpush3.bf16.msra.mxu0 %v174_v1  ;;  %v58_v6 = vld [vmem:[#allocation7 + $0x8] sm:$0xff]  ;;  %s136_s23 = sshll.u32 %s280_s2, 4  ;;  %s137_s23 = int_to_ptr.vmem [resolvable:$true] %s136_s23 }
  0x3a   :  { %158 = vmatprep.subr.bf16.mxu0 %v278_v0  ;;  %s243_s24 = scalar_lea.vmem %s137_s23, 256  ;;  %p248_p11 = scmp.lt.s32.totalorder %s137_s23, %s137_s23 }
  0x3b   :  { %p244_p10 = scmp.ne.s32.totalorder %s137_s23, %s243_s24  ;;  %p249_p12 = scmp.lt.s32.totalorder %s243_s24, %s243_s24 }
  0x3d   :  { %159 = vmatpush3.bf16.msra.mxu0 %v175_v2  ;;  %p250_p13 = por %p249_p12, %p248_p11 }
  0x3f   :  { %p251_p0 = pnand %p250_p13, %p244_p10 }
  0x40   :  { %161 = vmatmul.mubr.msk.bf16.vlgmr.msra.gmra.mrb[0].mxu0 %vm82_vm1, %v176_v3 }
 0x113   :  { %v120_v5 = vpop.f32.mrb[0].mxu0 }
 0x114   :  { %v127_v7 = vadd.f32 %v120_v5, %v57_v4  ;;  %v162_v8 = vpop.f32.mrb[1].mxu0 }
 0x115   :  { %v123_v9 = vpop.f32.mrb[2].mxu0 }
 0x116   :  { %129 = vst.msk [vmem:[#allocation8] sm:$0xff] %vm82_vm1, %v127_v7  ;;  %v128_v10 = vadd.f32 %v123_v9, %v58_v6  ;;  %v163_v11 = vpop.f32.mrb[3].mxu0 }
 0x118   :  { %130 = vst.msk [vmem:[#allocation8 + $0x8] sm:$0xff] %vm82_vm1, %v128_v10 }
 0x119   :  { %254 = shalt.err (!%p251_p0)
}
 0x11a   :  { %s255_s27 = scalar_lea.hbm %s365_s3, 256 }
 0x11b   :  { %p256_p1 = scmp.ne.s32.totalorder %s365_s3, %s255_s27  ;;  %p259_p2 = scmp.lt.u32.totalorder %s255_s27, %s365_s3 }
 0x11d   :  { %p261_p3 = pnand %p259_p2, %p256_p1 }
 0x11f   :  { %264 = shalt.err (!%p261_p3)
}
 0x120   :  { %142 = dma.vmem_to_hbm [thread:$0]  %s137_s23, 256, %s365_s3, [#allocation4], %s276_s0, %s276_s0, %s277_s15  }
 0x121   :  { %269 = dma.done.wait [#allocation4], 256  }
 0x122   :  { %270 = vsyncadd [#allocation4], 4294967040 }
 0x123   :  { %146 = vsyncpa [#allocation3], 1 }
 0x124   :  { %147 = vsyncpa [#allocation6], 1 }
 0x125   :  { %148 = vsyncpa [#allocation4], 1 }

// kernel: transformer_block.5
= control target key start
LH: loop header
LB: loop body
LE: loop exit
PB: predicated region body
PF: predicated region fallthrough
CT: control target
= control target key end

     0   :  { %s2551_s0 = inlined_call_operand.hbm [shape: bf16[3,16,32], index: 0, kind: input, shape index: {}, may-alias: {0,1,2}]   ;;  %s2552_s1 = inlined_call_operand.hbm [shape: bf16[3,16,32], index: 1, kind: input, shape index: {}, may-alias: {0,1,2}]   ;;  %s2553_s2 = inlined_call_operand.hbm [shape: bf16[3,16,32], index: 2, kind: input, shape index: {}, may-alias: {0,1,2}]   ;;  %s2554_s3 = inlined_call_operand.hbm [shape: f32[8,4], index: 3, kind: input, shape index: {}]   ;;  %s2555_s4 = inlined_call_operand.hbm [shape: f32[8,4], index: 4, kind: input, shape index: {}]   ;;  %s2556_s5 = inlined_call_operand.hbm [shape: f32[8,4], index: 5, kind: input, shape index: {}]   ;;  %s2557_s6 = inlined_call_operand.hbm [shape: f32[8,4], index: 6, kind: input, shape index: {}]   ;;  %s2558_s7 = inlined_call_operand.hbm [shape: bf16[1,16,32], index: 7, kind: output, shape index: {}]  }
   0x1   :  { %2576 = sst [smem:[#allocation26_spill]] %s2551_s0 }
   0x2   :  { %2577 = sst [smem:[#allocation27_spill]] %s2552_s1 }
   0x3   :  { %2578 = sst [smem:[#allocation28_spill]] %s2554_s3 }
   0x4   :  { %2579 = sst [smem:[#allocation29_spill]] %s2556_s5 }
   0x5   :  { %12 = vsyncpa [#allocation3], 0 }
   0x6   :  { %14 = vsyncpa [#allocation3 + $0x1], 0 }
   0x7   :  { %15 = vsyncpa [#allocation6], 0 }
   0x8   :  { %17 = vsyncpa [#allocation6 + $0x1], 0 }
   0x9   :  { %18 = vsyncpa [#allocation9], 0 }
   0xa   :  { %19 = vsyncpa [#allocation12], 0 }
   0xb   :  { %20 = vsyncpa [#allocation4], 0 }
   0xc   :  { %22 = vsyncpa [#allocation4 + $0x1], 0  ;;  %s1981_s24 = smov 0   ;;  %s1983_s25 = smov 0  }
   0xd   :  { %s1985_s26 = smov 0   ;;  %s1987_s27 = smov 0  }
   0xe   :  { %s1989_s28 = smov 0   ;;  %s1991_s29 = smov 0  }
   0xf LB: > { %2580 = sst [smem:[#allocation20_spill]] %s1896_s24  ;;  %s2012_s30 = sadd.s32 4294967295, %s1916_s29   ;;  %s1916_s29 = sphi %s1991_s29, %s28_s29   ;;  %s1912_s28 = sphi %s1989_s28, %s2619_s28   ;;  %s1908_s27 = sphi %s1987_s27, %s2618_s27   ;;  %s1904_s26 = sphi %s1985_s26, %s2622_s26   ;;  %s1900_s25 = sphi %s1983_s25, %s2621_s25   ;;  %s1896_s24 = sphi %s1981_s24, %s2620_s24  }
  0x10   : > { %2581 = sst [smem:[#allocation21_spill]] %s1912_s28  ;;  %p1375_p0 = scmp.ge.s32.totalorder %s1916_s29, 1 }
  0x11   : > { %2582 = sst [smem:[#allocation22_spill]] %s1916_s29  ;;  %p2559_p1 = scmp.eq.s32.totalorder %s2012_s30, 0 }
  0x12   : > { %p245_p2 = scmp.lt.s32.totalorder %s1916_s29, 3  ;;  %s1918_s9 = smov [#allocation8]  }
  0x13   : > { %s258_s10 = sshll.u32 %s1918_s9, 4  ;;  %s1919_s11 = smov [#allocation11]   ;;  %s259_s10 = int_to_ptr.vmem [resolvable:$true] %s258_s10 }
  0x14   : > { %p2017_p3 = pnand %p1375_p0, %p245_p2  ;;  %s280_s12 = sshll.u32 %s1919_s11, 4  ;;  %s2030_s12 = int_to_ptr.vmem [resolvable:$true] %s280_s12 }
  0x15   : > { %s2585_s3 = sld [smem:[#allocation28_spill]] }
  0x16   : > { %s2583_s8 = scalar_select %p2017_p3, 1, 0 }
  0x17   : > { %p1497_p5 = pneg %p2017_p3 }
  0x19   : > { %p2026_p6 = pnand %p1497_p5, %p2559_p1 }
  0x1b   : > { %s2584_s13 = scalar_select %p2026_p6, 1, 0 }
  0x1c   : > { %s1618_s16 = scalar_lea.hbm %s2585_s3, 128  ;;  %p2040_p8 = pneg %p2026_p6 }
  0x1d   : > { %p1619_p7 = scmp.ne.s32.totalorder %s2585_s3, %s1618_s16  ;;  %p1625_p11 = scmp.lt.u32.totalorder %s1618_s16, %s2585_s3 }
  0x1e   : > { %s2586_s19 = scalar_select %p2040_p8, 1, 0 }
  0x1f   : > { %p1621_p9 = pnand %p2040_p8, %p1619_p7 }
  0x21   : > { %p1622_p10 = pneg %p1621_p9 }
  0x23   : > { %p1627_p12 = pnand %p1625_p11, %p1622_p10 }
  0x25   : > { %1630 = shalt.err (!%p1627_p12)
}
  0x26   : > { %s1631_s22 = scalar_lea.vmem %s259_s10, 128  ;;  %p1639_p5 = scmp.lt.s32.totalorder %s259_s10, %s259_s10 }
  0x27   : > { %p1632_p13 = scmp.ne.s32.totalorder %s259_s10, %s1631_s22  ;;  %p1640_p4 = scmp.lt.s32.totalorder %s1631_s22, %s1631_s22 }
  0x29   : > { %p1634_p0 = pnand %p1632_p13, %p2040_p8  ;;  %p1641_p1 = por %p1640_p4, %p1639_p5 }
  0x2b   : > { %p1635_p2 = pneg %p1634_p0 }
  0x2d   : > { %p1642_p3 = pnand %p1641_p1, %p1635_p2 }
  0x2f   : > { %1645 = shalt.err (!%p1642_p3)
}
  0x30   : > { %1500 = dma.hbm_to_vmem [thread:$0]  (!%p2026_p6), %s2585_s3, 128, %s259_s10, [#allocation9]  }
  0x31   : > { %s2587_s5 = sld [smem:[#allocation29_spill]] }
  0x37   : > { %s1646_s15 = scalar_lea.hbm %s2587_s5, 128 }
  0x38   : > { %p1647_p7 = scmp.ne.s32.totalorder %s2587_s5, %s1646_s15  ;;  %p1653_p1 = scmp.lt.u32.totalorder %s1646_s15, %s2587_s5 }
  0x3a   : > { %p1649_p9 = pnand %p1647_p7, %p2040_p8 }
  0x3c   : > { %p1650_p4 = pneg %p1649_p9 }
  0x3e   : > { %p1655_p3 = pnand %p1653_p1, %p1650_p4 }
  0x40   : > { %1658 = shalt.err (!%p1655_p3)
}
  0x41   : > { %s1659_s10 = scalar_lea.vmem %s2030_s12, 128  ;;  %p1667_p13 = scmp.lt.s32.totalorder %s2030_s12, %s2030_s12 }
  0x42   : > { %p1660_p10 = scmp.ne.s32.totalorder %s2030_s12, %s1659_s10  ;;  %p1668_p0 = scmp.lt.s32.totalorder %s1659_s10, %s1659_s10 }
  0x44   : > { %p1662_p11 = pnand %p1660_p10, %p2040_p8  ;;  %p1669_p2 = por %p1668_p0, %p1667_p13 }
  0x46   : > { %p1663_p12 = pneg %p1662_p11 }
  0x48   : > { %p1670_p5 = pnand %p1669_p2, %p1663_p12 }
  0x4a   : > { %1673 = shalt.err (!%p1670_p5)
}
  0x4b   : > { %1506 = dma.hbm_to_vmem [thread:$0]  (!%p2026_p6), %s2587_s5, 128, %s2030_s12, [#allocation12]  }
  0x4c   : > { %s1374_s23 = sadd.s32 4294967294, %s1916_s29   ;;  %s40_s9 = sadd.s32 1, %s1912_s28 }
  0x4d   : > { %p42_p7 = scmp.ge.s32.totalorder %s40_s9, 2  ;;  %s49_s11 = sadd.s32 1, %s1904_s26 }
  0x4e   : > { %p56_p9 = scmp.ne.s32.totalorder %s1904_s26, %s1900_s25  ;;  %p57_p4 = scmp.eq.s32.totalorder %s1916_s29, 0 }
  0x4f   : > { %s2624_s9 = smov (%p42_p7, %s40_s9), 0  ;;  %p62_p3 = scmp.ne.s32.totalorder %s1900_s25, %s1896_s24 }
  0x50   : > { %2588 = sst [smem:[#allocation23_spill]] %s2624_s9  ;;  %p2087_p1 = por %p57_p4, %p56_p9 }
  0x51   : > { %s45_s12 = ssub.s32 %s1912_s28, %s2624_s9  ;;  %p232_p10 = scmp.eq.s32.totalorder %s2012_s30, 1 }
  0x52   : > { %p47_p11 = scmp.eq.s32.totalorder %s45_s12, 0  ;;  %p2590_p12 = scmp.eq.s32.totalorder %s2012_s30, 0 }
  0x53   : > { %p2102_p0 = por %p232_p10, %p56_p9  ;;  %p238_p2 = scmp.eq.s32.totalorder %s1374_s23, 1 }
  0x54   : > { %p2098_p13 = por %p2590_p12, %p62_p3  ;;  %p1528_p7 = scmp.lt.s32.totalorder %s1916_s29, 2 }
  0x55   : > { %s2592_s16 = scalar_select %p2102_p0, 1, 0 }
  0x56   : > { %s2591_s15 = scalar_select %p2098_p13, 1, 0 }
  0x57   : > { %s2107_s17 = scalar_select %p47_p11, %s1904_s26, %s49_s11  }
  0x58   : > { %p2109_p5 = por %p238_p2, %p62_p3  ;;  %s2563_s20 = sand.u32 1, %s1904_s26  }
  0x59   : > { %2593 = sst [smem:[#allocation24_spill]] %s2107_s17  ;;  %s2116_s10 = sshll.u32 %s1912_s28, 6 }
  0x5a   : > { %s2594_s18 = scalar_select %p2109_p5, 1, 0 }
  0x5b   : > { %s2120_s21 = sshll.u32 %s2563_s20, 2  ;;  %p2124_p9 = pnand %p1528_p7, %p2087_p1 }
  0x5c   : > { %2595 = sst [smem:[#allocation25_spill]] %s2594_s18  ;;  %s322_s23 = sand.u32 1, %s1916_s29  }
  0x5d   : > { %s2596_s22 = scalar_select %p2124_p9, 1, 0 }
  0x5e   : > { %s2597_s1 = sld [smem:[#allocation27_spill]]  ;;  %s326_s5 = scalar_lea.vmem [#allocation5], %s2120_s21 }
  0x5f   : > { %s336_s9 = sshll.u32 %s326_s5, 4  ;;  %s2138_s14 = scalar_lea.sflag [#allocation6], %s322_s23  ;;  %s2136_s9 = int_to_ptr.vmem [resolvable:$true] %s336_s9 }
  0x60   : > { %p2143_p1 = pneg %p2124_p9 }
  0x64   : > { %s1246_s3 = scalar_lea.hbm %s2597_s1, %s2116_s10  ;;  %s1679_s12 = scalar_lea.hbm %s2597_s1, 384 }
  0x65   : > { %s2134_s28 = scalar_lea.hbm %s1246_s3, 128  ;;  %s1704_s20 = scalar_lea.hbm %s1246_s3, 192 }
  0x66   : > { %p1675_p4 = scmp.ne.s32.totalorder %s2134_s28, %s1704_s20  ;;  %p1680_p11 = scmp.lt.u32.totalorder %s2134_s28, %s2597_s1 }
  0x67   : > { %p1681_p12 = scmp.lt.u32.totalorder %s1679_s12, %s1704_s20  ;;  %p1683_p7 = scmp.lt.u32.totalorder %s1704_s20, %s2134_s28 }
  0x68   : > { %p1677_p3 = pnand %p2143_p1, %p1675_p4 }
  0x69   : > { %p1682_p2 = por %p1681_p12, %p1680_p11 }
  0x6a   : > { %p1678_p10 = pneg %p1677_p3 }
  0x6b   : > { %p1684_p5 = por %p1683_p7, %p1682_p2 }
  0x6d   : > { %p1685_p0 = pnand %p1684_p5, %p1678_p10 }
  0x6f   : > { %1688 = shalt.err (!%p1685_p0)
}
  0x70   : > { %s1689_s3 = scalar_lea.vmem %s2136_s9, 64  ;;  %s1920_s23 = smov [#allocation5]  }
  0x71   : > { %p1690_p4 = scmp.ne.s32.totalorder %s2136_s9, %s1689_s3  ;;  %s1694_s5 = sshll.u32 %s1920_s23, 4  ;;  %s1695_s5 = int_to_ptr.vmem [resolvable:$false] %s1694_s5 }
  0x72   : > { %s1696_s29 = scalar_lea.vmem %s1695_s5, 128  ;;  %p1697_p6 = scmp.lt.s32.totalorder %s2136_s9, %s1695_s5 }
  0x73   : > { %p1692_p3 = pnand %p1690_p4, %p2143_p1  ;;  %p1698_p8 = scmp.lt.s32.totalorder %s1696_s29, %s1689_s3 }
  0x75   : > { %p1693_p13 = pneg %p1692_p3  ;;  %p1699_p11 = por %p1698_p8, %p1697_p6 }
  0x77   : > { %p1700_p12 = pnand %p1699_p11, %p1693_p13 }
  0x79   : > { %1703 = shalt.err (!%p1700_p12)
}
  0x7a   : > { %1516 = dma.hbm_to_vmem [thread:$0]  (!%p2124_p9), %s2134_s28, 64, %s2136_s9, %s2138_s14  }
  0x7b   : > { %s1921_s18 = smov [#allocation10]   ;;  %s1922_s11 = smov [#allocation13]  }
  0x7c   : > { %s269_s20 = sshll.u32 %s1921_s18, 4  ;;  %s291_s12 = sshll.u32 %s1922_s11, 4  ;;  %s270_s20 = int_to_ptr.vmem [resolvable:$true] %s269_s20  ;;  %s2167_s12 = int_to_ptr.vmem [resolvable:$true] %s291_s12 }
  0x7d   : > { %s1705_s3 = scalar_lea.hbm %s2555_s4, 128  ;;  %p2599_p8 = scmp.ne.s32.totalorder %s2586_s19, 0 }
  0x7e   : > { %p1706_p6 = scmp.ne.s32.totalorder %s2555_s4, %s1705_s3  ;;  %p1712_p5 = scmp.lt.u32.totalorder %s1705_s3, %s2555_s4 }
  0x80   : > { %p1708_p13 = pnand %p1706_p6, %p2599_p8 }
  0x82   : > { %p1709_p0 = pneg %p1708_p13 }
  0x84   : > { %p1714_p10 = pnand %p1712_p5, %p1709_p0 }
  0x86   : > { %1717 = shalt.err (!%p1714_p10)
}
  0x87   : > { %s1718_s9 = scalar_lea.vmem %s270_s20, 128  ;;  %p1726_p3 = scmp.lt.s32.totalorder %s270_s20, %s270_s20 }
  0x88   : > { %p1719_p2 = scmp.ne.s32.totalorder %s270_s20, %s1718_s9  ;;  %p1727_p11 = scmp.lt.s32.totalorder %s1718_s9, %s1718_s9 }
  0x8a   : > { %p1721_p7 = pnand %p1719_p2, %p2599_p8  ;;  %p1728_p12 = por %p1727_p11, %p1726_p3 }
  0x8c   : > { %p1722_p4 = pneg %p1721_p7 }
  0x8e   : > { %p1729_p9 = pnand %p1728_p12, %p1722_p4 }
  0x90   : > { %1732 = shalt.err (!%p1729_p9)
}
  0x91   : > { %p2600_p6 = scmp.ne.s32.totalorder %s2584_s13, 0  ;;  %s1733_s23 = scalar_lea.hbm %s2557_s6, 128 }
  0x92   : > { %p1734_p13 = scmp.ne.s32.totalorder %s2557_s6, %s1733_s23  ;;  %p1740_p9 = scmp.lt.u32.totalorder %s1733_s23, %s2557_s6 }
  0x93   : > { %1503 = dma.hbm_to_vmem [thread:$0]  (!%p2600_p6), %s2555_s4, 128, %s270_s20, [#allocation9]  }
  0x94   : > { %p1736_p0 = pnand %p1734_p13, %p2599_p8 }
  0x96   : > { %p1737_p5 = pneg %p1736_p0 }
  0x98   : > { %p1742_p10 = pnand %p1740_p9, %p1737_p5 }
  0x9a   : > { %1745 = shalt.err (!%p1742_p10)
}
  0x9b   : > { %s1746_s20 = scalar_lea.vmem %s2167_s12, 128  ;;  %p1754_p3 = scmp.lt.s32.totalorder %s2167_s12, %s2167_s12 }
  0x9c   : > { %p1747_p2 = scmp.ne.s32.totalorder %s2167_s12, %s1746_s20  ;;  %p1755_p11 = scmp.lt.s32.totalorder %s1746_s20, %s1746_s20 }
  0x9e   : > { %p1749_p7 = pnand %p1747_p2, %p2599_p8  ;;  %p1756_p12 = por %p1755_p11, %p1754_p3 }
  0xa0   : > { %p1750_p4 = pneg %p1749_p7 }
  0xa2   : > { %p1757_p13 = pnand %p1756_p12, %p1750_p4 }
  0xa4   : > { %1760 = shalt.err (!%p1757_p13)
}
  0xa5   : > { %1509 = dma.hbm_to_vmem [thread:$0]  (!%p2600_p6), %s2557_s6, 128, %s2167_s12, [#allocation12]  }
  0xa6   : > { %s2601_s0 = sld [smem:[#allocation26_spill]]  ;;  %s306_s11 = scalar_lea.vmem [#allocation2], %s2120_s21 }
  0xa7   : > { %s315_s13 = sshll.u32 %s306_s11, 4  ;;  %s2602_s23 = sand.u32 1, %s1904_s26   ;;  %s316_s13 = int_to_ptr.vmem [resolvable:$true] %s315_s13 }
  0xa8   : > { %s303_s5 = scalar_lea.sflag [#allocation3], %s2602_s23 }
  0xac   : > { %s2214_s24 = scalar_lea.hbm %s2601_s0, %s2116_s10  ;;  %s1766_s28 = scalar_lea.hbm %s2601_s0, 384 }
  0xad   : > { %s1761_s3 = scalar_lea.hbm %s2214_s24, 64  ;;  %p1767_p6 = scmp.lt.u32.totalorder %s2214_s24, %s2601_s0 }
  0xae   : > { %p1762_p8 = scmp.ne.s32.totalorder %s2214_s24, %s1761_s3  ;;  %p1768_p9 = scmp.lt.u32.totalorder %s1766_s28, %s1761_s3 }
  0xaf   : > { %p1770_p2 = scmp.lt.u32.totalorder %s1761_s3, %s2214_s24 }
  0xb0   : > { %p1764_p0 = pnand %p1762_p8, %p2143_p1  ;;  %p1769_p10 = por %p1768_p9, %p1767_p6 }
  0xb2   : > { %p1765_p5 = pneg %p1764_p0  ;;  %p1771_p7 = por %p1770_p2, %p1769_p10 }
  0xb4   : > { %p1772_p4 = pnand %p1771_p7, %p1765_p5 }
  0xb6   : > { %1775 = shalt.err (!%p1772_p4)
}
  0xb7   : > { %s1776_s1 = scalar_lea.vmem %s316_s13, 64  ;;  %s1923_s19 = smov [#allocation2]  }
  0xb8   : > { %p1777_p3 = scmp.ne.s32.totalorder %s316_s13, %s1776_s1  ;;  %s1781_s18 = sshll.u32 %s1923_s19, 4  ;;  %s1782_s18 = int_to_ptr.vmem [resolvable:$false] %s1781_s18 }
  0xb9   : > { %s1783_s11 = scalar_lea.vmem %s1782_s18, 128  ;;  %p1784_p13 = scmp.lt.s32.totalorder %s316_s13, %s1782_s18 }
  0xba   : > { %p1779_p11 = pnand %p1777_p3, %p2143_p1  ;;  %p1785_p8 = scmp.lt.s32.totalorder %s1783_s11, %s1776_s1 }
  0xbc   : > { %p1780_p12 = pneg %p1779_p11  ;;  %p1786_p0 = por %p1785_p8, %p1784_p13 }
  0xbe   : > { %p1787_p6 = pnand %p1786_p0, %p1780_p12 }
  0xc0   : > { %1790 = shalt.err (!%p1787_p6)
}
  0xc1   : > { %p2603_p9 = scmp.ne.s32.totalorder %s2596_s22, 0  ;;  %s1254_s12 = scalar_lea.hbm %s2553_s2, %s2116_s10 }
  0xc2   : > { %s347_s29 = scalar_lea.vmem [#allocation7], %s2120_s21  ;;  %s1255_s20 = scalar_lea.hbm %s1254_s12, 256 }
  0xc3   : > { %1513 = dma.hbm_to_vmem [thread:$0]  (!%p2603_p9), %s2214_s24, 64, %s316_s13, %s303_s5  }
  0xc4   : > { %s357_s28 = sshll.u32 %s347_s29, 4  ;;  %s1821_s9 = scalar_lea.hbm %s1254_s12, 320  ;;  %s358_s28 = int_to_ptr.vmem [resolvable:$true] %s357_s28 }
  0xc5   : > { %p1792_p5 = scmp.ne.s32.totalorder %s1255_s20, %s1821_s9  ;;  %s1796_s18 = scalar_lea.hbm %s2553_s2, 384 }
  0xc6   : > { %p1797_p7 = scmp.lt.u32.totalorder %s1255_s20, %s2553_s2  ;;  %p1798_p4 = scmp.lt.u32.totalorder %s1796_s18, %s1821_s9 }
  0xc7   : > { %p1794_p10 = pnand %p1792_p5, %p2143_p1  ;;  %p1800_p11 = scmp.lt.u32.totalorder %s1821_s9, %s1255_s20 }
  0xc8   : > { %p1799_p3 = por %p1798_p4, %p1797_p7 }
  0xc9   : > { %p1795_p2 = pneg %p1794_p10 }
  0xca   : > { %p1801_p12 = por %p1800_p11, %p1799_p3 }
  0xcc   : > { %p1802_p13 = pnand %p1801_p12, %p1795_p2 }
  0xce   : > { %1805 = shalt.err (!%p1802_p13)
}
  0xcf   : > { %s1806_s10 = scalar_lea.vmem %s358_s28, 64  ;;  %s1924_s21 = smov [#allocation7]  }
  0xd0   : > { %p1807_p8 = scmp.ne.s32.totalorder %s358_s28, %s1806_s10  ;;  %s1811_s24 = sshll.u32 %s1924_s21, 4  ;;  %s1812_s24 = int_to_ptr.vmem [resolvable:$false] %s1811_s24 }
  0xd1   : > { %s1813_s13 = scalar_lea.vmem %s1812_s24, 128  ;;  %p1814_p5 = scmp.lt.s32.totalorder %s358_s28, %s1812_s24 }
  0xd2   : > { %p1809_p0 = pnand %p1807_p8, %p2143_p1  ;;  %p1815_p10 = scmp.lt.s32.totalorder %s1813_s13, %s1806_s10 }
  0xd4   : > { %p1810_p6 = pneg %p1809_p0  ;;  %p1816_p9 = por %p1815_p10, %p1814_p5 }
  0xd6   : > { %p1817_p4 = pnand %p1816_p9, %p1810_p6 }
  0xd8   : > { %1820 = shalt.err (!%p1817_p4)
}
  0xd9   : > { %p2604_p7 = scmp.ne.s32.totalorder %s2596_s22, 0  ;;  %p2605_p2 = scmp.ne.s32.totalorder %s2583_s8, 0 }
  0xda   : > { %s2257_s0 = sand.u32 (!%p2605_p2), 1, %s1900_s25   ;;  %p2606_p1 = scmp.ne.s32.totalorder (!%p2605_p2), %s2591_s15, 0 }
  0xdb   : > { %1519 = dma.hbm_to_vmem [thread:$0]  (!%p2604_p7), %s1255_s20, 64, %s358_s28, %s2138_s14  }
  0xdc   : > { %366 = sbr.rel (%p2605_p2) target bundleno = 1752 (0x6d8), region = 48  ;;  %s2260_s17 = sshll.u32 (!%p2605_p2), %s2257_s0, 2 }
  0xdd   : > { %s369_s5 = scalar_lea.sflag (!%p2605_p2), [#allocation3], %s2257_s0  ;;  %s372_s23 = scalar_lea.vmem (!%p2605_p2), [#allocation2], %s2260_s17 }
  0xe3   : > { %1875 = dma.done.wait (%p2606_p1), %s369_s5, 64  }
  0xe4   : > { %1877 = vsyncadd (%p2606_p1), %s369_s5, 4294967232  ;;  %s377_s8 = sand.u32 1, %s2012_s30   ;;  %s381_s14 = scalar_lea.vmem [#allocation5], %s2260_s17 }
  0xe5   : > { %s378_s22 = scalar_lea.sflag [#allocation6], %s377_s8 }
  0xe6   : > { %1879 = dma.done.wait (%p2606_p1), %s378_s22, 128  }
  0xe7   : > { %1881 = vsyncadd (%p2606_p1), %s378_s22, 4294967168  ;;  %s390_s3 = scalar_lea.vmem [#allocation7], %s2260_s17  ;;  %p2607_p9 = scmp.eq.s32.totalorder %s2012_s30, 0 }
  0xe9   : > { %1883 = dma.done.wait (%p2607_p9), [#allocation9], 256   ;;  %p2608_p3 = pmov %p2607_p9 }
  0xeb   : > { %1885 = vsyncadd (%p2608_p3), [#allocation9], 4294967040  ;;  %p2609_p11 = pmov %p2608_p3 }
  0xec   : > { %p2610_p12 = pmov %p2608_p3 }
  0xed   : > { %1887 = dma.done.wait (%p2609_p11), [#allocation12], 256  }
  0xee   : > { %1889 = vsyncadd (%p2610_p12), [#allocation12], 4294967040  ;;  %v2283_v0 = vld [vmem:[#allocation11] sm:$0xff]  ;;  %v2285_v1 = vld [vmem:[#allocation13] sm:$0xff]  ;;  %s1925_s15 = smov 4   ;;  %s1926_s30 = smov 124  }
  0xef   : > { %505 = vrot.lane.b32.xlu0 %v2283_v0, %s1925_s15  ;;  %494 = vrot.lane.b32.xlu1 %v2285_v1, %s1925_s15  ;;  %v2291_v2 = vld [vmem:[#allocation8] sm:$0xff]  ;;  %v2295_v3 = vld [vmem:[#allocation10] sm:$0xff]  ;;  %v452_v4 = vld [vmem:[%s381_s14] sm:$0xf]  ;;  %v1927_v16 = vmov 0.0   ;;  %vm1928_vm0 = vmmov 0  }
  0xf0   : > { %v2299_v5 = vunpack.c.l.bf16 %v452_v4  ;;  %v450_v6 = vld [vmem:[%s372_s23] sm:$0xf]  ;;  %1425 = vmatprep.subr.bf16.mxu0 %v1927_v16  ;;  %1431 = vmatprep.subr.bf16.mxu1 %v1927_v16  ;;  %s1929_s12 = smov 12   ;;  %s1930_s29 = smov 20   ;;  %vm490_vm1 = vcmask 31744   ;;  %vm521_vm2 = vcmask 64512  }
  0xf1   : > { %v2302_v10 = vunpack.c.l.bf16 %v450_v6  ;;  %1427 = vmatprep.mubr.msk.bf16.mxu0 %vm1928_vm0, %v1927_v16  ;;  %1433 = vmatprep.mubr.msk.bf16.mxu1 %vm1928_vm0, %v1927_v16  ;;  %s1931_s28 = smov 28   ;;  %s1932_s20 = smov 8   ;;  %vm582_vm4 = vcmask 1043456   ;;  %vm1181_vm5 = vcmask 130048   ;;  %vm1183_vm6 = vcmask 195584  }
  0xf2   : > { %v503_v17 = vmul.f32 %v2285_v1, %v2299_v5  ;;  %v492_v27 = vmul.f32 %v2283_v0, %v2299_v5  ;;  %s1933_s9 = smov 16   ;;  %s1934_s1 = smov 24   ;;  %vm1186_vm7 = vcmask 257024  }
  0xf3   : > { %477 = vrot.lane.b32.xlu0 %v2291_v2, %s1925_s15  ;;  %v475_v20 = vmul.f32 %v2295_v3, %v2302_v10  ;;  %v464_v28 = vmul.f32 %v2291_v2, %v2302_v10  ;;  %s1935_s19 = smov 120   ;;  %s1936_s18 = smov 112  }
  0xf4   : > { %s1937_s11 = smov 116   ;;  %s1938_s10 = smov 108  }
  0xf5   : > { %s1939_s21 = smov 104   ;;  %s1406_s24 = sshll.u32 %s1908_s27, 6 }
  0xf6   : > { %s446_s13 = scalar_lea.vmem [#allocation14], %s2260_s17  ;;  %s2502_s22 = scalar_lea.hbm %s2558_s7, %s1406_s24 }
  0xf7   : > { %466 = vrot.lane.b32.xlu0 %v2295_v3, %s1925_s15  ;;  %s1204_s5 = sshll.u32 %s446_s13, 4  ;;  %s1189_s14 = scalar_lea.sflag [#allocation4], %s2257_s0  ;;  %s2504_s5 = int_to_ptr.vmem [resolvable:$true] %s1204_s5 }
  0xf8   : > { %s1822_s27 = scalar_lea.vmem %s2504_s5, 64  ;;  %p2611_p8 = scmp.ne.s32.totalorder %s2592_s16, 0 }
  0xf9   : > { %p1823_p13 = scmp.ne.s32.totalorder %s2504_s5, %s1822_s27  ;;  %s1940_s17 = smov [#allocation14]  }
  0xfb   : > { %p1824_p0 = pnand %p1823_p13, %p2611_p8 }
  0xfd   : > { %p1825_p6 = pneg %p1824_p0 }
 0x161   : > { %v506_v7 = vpop.permute.xlu0 %505  ;;  %v495_v8 = vpop.permute.xlu1 %494 }
 0x162   : > { %v508_v9 = vmul.f32 %v506_v7, %v2299_v5  ;;  %v497_v11 = vmul.f32 %v495_v8, %v2299_v5 }
 0x164   : > { %510 = vrot.lane.b32.xlu1 %v508_v9, %s1926_s30  ;;  %499 = vrot.lane.b32.xlu0 %v497_v11, %s1926_s30 }
 0x165   : > { %v478_v12 = vpop.permute.xlu0 %477 }
 0x166   : > { %v480_v13 = vmul.f32 %v478_v12, %v2302_v10 }
 0x168   : > { %482 = vrot.lane.b32.xlu1 %v480_v13, %s1926_s30 }
 0x169   : > { %v467_v14 = vpop.permute.xlu0 %466 }
 0x16a   : > { %v469_v15 = vmul.f32 %v467_v14, %v2302_v10 }
 0x16c   : > { %471 = vrot.lane.b32.xlu0 %v469_v15, %s1926_s30 }
 0x170   : > { %667 = vrot.lane.b32.xlu0 %v2285_v1, %s1929_s12 }
 0x174   : > { %632 = vrot.lane.b32.xlu0 %v2295_v3, %s1929_s12 }
 0x178   : > { %849 = vrot.lane.b32.xlu0 %v2285_v1, %s1930_s29 }
 0x17c   : > { %814 = vrot.lane.b32.xlu0 %v2295_v3, %s1930_s29 }
 0x180   : > { %1028 = vrot.lane.b32.xlu0 %v2285_v1, %s1931_s28 }
 0x184   : > { %993 = vrot.lane.b32.xlu0 %v2295_v3, %s1931_s28 }
 0x188   : > { %663 = vrot.lane.b32.xlu0 %v2283_v0, %s1932_s20 }
 0x1d6   : > { %v511_v18 = vpop.permute.xlu1 %510  ;;  %v500_v23 = vpop.permute.xlu0 %499 }
 0x1d7   : > { %v513_v19 = vadd.f32 %v511_v18, %v503_v17  ;;  %v502_v29 = vsub.f32 %v492_v27, %v500_v23 }
 0x1d9   : > { %515 = vrot.lane.b32.xlu1 %v513_v19, %s1925_s15 }
 0x1da   : > { %v483_v21 = vpop.permute.xlu1 %482 }
 0x1db   : > { %v485_v22 = vadd.f32 %v483_v21, %v475_v20 }
 0x1dd   : > { %487 = vrot.lane.b32.xlu1 %v485_v22, %s1925_s15 }
 0x1de   : > { %v472_v24 = vpop.permute.xlu0 %471 }
 0x1df   : > { %v474_v32 = vsub.f32 %v464_v28, %v472_v24 }
 0x1e1   : > { %680 = vrot.lane.b32.xlu1 %v2283_v0, %s1929_s12 }
 0x1e2   : > { %v668_v25 = vpop.permute.xlu0 %667 }
 0x1e3   : > { %v670_v26 = vmul.f32 %v668_v25, %v2299_v5 }
 0x1e5   : > { %645 = vrot.lane.b32.xlu1 %v2291_v2, %s1929_s12  ;;  %672 = vrot.lane.b32.xlu0 %v670_v26, %s1926_s30 }
 0x1e6   : > { %v633_v33 = vpop.permute.xlu0 %632 }
 0x1e7   : > { %v635_v37 = vmul.f32 %v633_v33, %v2302_v10 }
 0x1e9   : > { %862 = vrot.lane.b32.xlu1 %v2283_v0, %s1930_s29  ;;  %628 = vrot.lane.b32.xlu0 %v2291_v2, %s1932_s20 }
 0x1ea   : > { %v850_v39 = vpop.permute.xlu0 %849 }
 0x1eb   : > { %v852_v42 = vmul.f32 %v850_v39, %v2299_v5 }
 0x1ed   : > { %827 = vrot.lane.b32.xlu1 %v2291_v2, %s1930_s29  ;;  %845 = vrot.lane.b32.xlu0 %v2283_v0, %s1933_s9 }
 0x1ee   : > { %v815_v45 = vpop.permute.xlu0 %814 }
 0x1ef   : > { %v817_v48 = vmul.f32 %v815_v45, %v2302_v10 }
 0x1f1   : > { %1041 = vrot.lane.b32.xlu1 %v2283_v0, %s1931_s28  ;;  %637 = vrot.lane.b32.xlu0 %v635_v37, %s1926_s30 }
 0x1f2   : > { %v1029_v49 = vpop.permute.xlu0 %1028 }
 0x1f3   : > { %v1031_v51 = vmul.f32 %v1029_v49, %v2299_v5 }
 0x1f5   : > { %1006 = vrot.lane.b32.xlu1 %v2291_v2, %s1931_s28  ;;  %854 = vrot.lane.b32.xlu0 %v852_v42, %s1926_s30 }
 0x1f6   : > { %v994_v52 = vpop.permute.xlu0 %993 }
 0x1f7   : > { %v996_v54 = vmul.f32 %v994_v52, %v2302_v10 }
 0x1f9   : > { %676 = vrot.lane.b32.xlu1 %v2285_v1, %s1932_s20  ;;  %810 = vrot.lane.b32.xlu0 %v2291_v2, %s1933_s9 }
 0x1fa   : > { %v664_v60 = vpop.permute.xlu0 %663 }
 0x1fb   : > { %v666_v61 = vmul.f32 %v664_v60, %v2299_v5 }
 0x1fd   : > { %1024 = vrot.lane.b32.xlu0 %v2283_v0, %s1934_s1 }
 0x201   : > { %819 = vrot.lane.b32.xlu0 %v817_v48, %s1926_s30 }
 0x205   : > { %1033 = vrot.lane.b32.xlu0 %v1031_v51, %s1926_s30 }
 0x209   : > { %989 = vrot.lane.b32.xlu0 %v2291_v2, %s1934_s1 }
 0x20d   : > { %998 = vrot.lane.b32.xlu0 %v996_v54, %s1926_s30  ;;  %v2425_v54 = vld [vmem:[%s390_s3] sm:$0xf]  ;;  %s1826_s3 = sshll.u32 %s1940_s17, 4  ;;  %s1827_s3 = int_to_ptr.vmem [resolvable:$false] %s1826_s3 }
 0x20e   : > { %s1828_s15 = scalar_lea.vmem %s1827_s3, 128  ;;  %p1829_p5 = scmp.lt.s32.totalorder %s2504_s5, %s1827_s3 }
 0x20f   : > { %p1830_p10 = scmp.lt.s32.totalorder %s1828_s15, %s1822_s27 }
 0x211   : > { %p1831_p4 = por %p1830_p10, %p1829_p5 }
 0x213   : > { %p1832_p7 = pnand %p1831_p4, %p1825_p6 }
 0x24b   : > { %v516_v30 = vpop.permute.xlu1 %515 }
 0x24c   : > { %v518_v31 = vsel %vm490_vm1, %v502_v29, %v516_v30 }
 0x24d   : > { %v520_v34 = vpack.c.bf16 %v518_v31, %v518_v31 }
 0x24f   : > { %v526_v35 = vsel %vm521_vm2, %v520_v34, 0  ;;  %v488_v36 = vpop.permute.xlu1 %487 }
 0x250   : > { %1426 = vmatpush3.bf16.xpose.msra.mxu0 %v526_v35  ;;  %v491_v38 = vsel %vm490_vm1, %v474_v32, %v488_v36 }
 0x251   : > { %1443 = vmatprep.subr.bf16.mxu0 %v1927_v16  ;;  %v519_v40 = vpack.c.bf16 %v491_v38, %v491_v38 }
 0x253   : > { %v681_v41 = vpop.permute.xlu1 %680 }
 0x254   : > { %v683_v43 = vmul.f32 %v681_v41, %v2299_v5 }
 0x256   : > { %685 = vrot.lane.b32.xlu1 %v683_v43, %s1926_s30 }
 0x257   : > { %1428 = vmatmul.mubr.msk.bf16.vlgmr.msra.gmra.mrb[0].mxu0 %vm521_vm2, %v519_v40  ;;  %v646_v44 = vpop.permute.xlu1 %645  ;;  %v673_v62 = vpop.permute.xlu0 %672 }
 0x258   : > { %1445 = vmatprep.mubr.msk.bf16.mxu0 %vm1928_vm0, %v1927_v16  ;;  %v648_v46 = vmul.f32 %v646_v44, %v2302_v10  ;;  %v675_v63 = vsub.f32 %v666_v61, %v673_v62 }
 0x25a   : > { %641 = vrot.lane.b32.xlu1 %v2295_v3, %s1932_s20 }
 0x25b   : > { %v863_v47 = vpop.permute.xlu1 %862  ;;  %v629_v0 = vpop.permute.xlu0 %628 }
 0x25c   : > { %v865_v50 = vmul.f32 %v863_v47, %v2299_v5 }
 0x25e   : > { %858 = vrot.lane.b32.xlu1 %v2285_v1, %s1933_s9 }
 0x25f   : > { %v828_v53 = vpop.permute.xlu1 %827 }
 0x260   : > { %v830_v55 = vmul.f32 %v828_v53, %v2302_v10 }
 0x262   : > { %650 = vrot.lane.b32.xlu1 %v648_v46, %s1926_s30 }
 0x263   : > { %v1042_v56 = vpop.permute.xlu1 %1041 }
 0x264   : > { %v1044_v57 = vmul.f32 %v1042_v56, %v2299_v5 }
 0x266   : > { %867 = vrot.lane.b32.xlu1 %v865_v50, %s1926_s30 }
 0x267   : > { %v1007_v58 = vpop.permute.xlu1 %1006 }
 0x268   : > { %v1009_v59 = vmul.f32 %v1007_v58, %v2302_v10 }
 0x26a   : > { %823 = vrot.lane.b32.xlu1 %v2295_v3, %s1933_s9 }
 0x26b   : > { %v677_v2 = vpop.permute.xlu1 %676 }
 0x26c   : > { %v679_v4 = vmul.f32 %v677_v2, %v2299_v5 }
 0x26e   : > { %1037 = vrot.lane.b32.xlu1 %v2285_v1, %s1934_s1  ;;  %v846_v1 = vpop.permute.xlu0 %845 }
 0x26f   : > { %v848_v18 = vmul.f32 %v846_v1, %v2299_v5 }
 0x272   : > { %832 = vrot.lane.b32.xlu1 %v830_v55, %s1926_s30  ;;  %v638_v6 = vpop.permute.xlu0 %637  ;;  %v584_v55 = vsel %vm582_vm4, %v2425_v54, 0 }
 0x273   : > { %1432 = vmatpush3.bf16.msra.mxu1 %v584_v55 }
 0x274   : > { %1437 = vmatprep.subr.bf16.mxu1 %v1927_v16 }
 0x276   : > { %1046 = vrot.lane.b32.xlu1 %v1044_v57, %s1926_s30  ;;  %v855_v9 = vpop.permute.xlu0 %854 }
 0x277   : > { %v857_v24 = vsub.f32 %v848_v18, %v855_v9 }
 0x27a   : > { %1002 = vrot.lane.b32.xlu1 %v2295_v3, %s1934_s1  ;;  %v631_v3 = vmul.f32 %v629_v0, %v2302_v10  ;;  %v811_v13 = vpop.permute.xlu0 %810 }
 0x27b   : > { %v813_v29 = vmul.f32 %v811_v13, %v2302_v10 }
 0x27c   : > { %v640_v11 = vsub.f32 %v631_v3, %v638_v6 }
 0x27e   : > { %1011 = vrot.lane.b32.xlu1 %v1009_v59, %s1926_s30  ;;  %v1025_v17 = vpop.permute.xlu0 %1024 }
 0x27f   : > { %v1027_v22 = vmul.f32 %v1025_v17, %v2299_v5 }
 0x282   : > { %690 = vrot.lane.b32.xlu1 %v675_v63, %s1935_s19  ;;  %v820_v21 = vpop.permute.xlu0 %819 }
 0x283   : > { %v822_v31 = vsub.f32 %v813_v29, %v820_v21 }
 0x286   : > { %v1034_v26 = vpop.permute.xlu0 %1033 }
 0x287   : > { %v1036_v27 = vsub.f32 %v1027_v22, %v1034_v26 }
 0x28a   : > { %v990_v34 = vpop.permute.xlu0 %989 }
 0x28b   : > { %v992_v38 = vmul.f32 %v990_v34, %v2302_v10 }
 0x28e   : > { %v999_v40 = vpop.permute.xlu0 %998 }
 0x28f   : > { %v1001_v42 = vsub.f32 %v992_v38, %v999_v40 }
 0x2c8   : > { %v686_v7 = vpop.permute.xlu1 %685 }
 0x2c9   : > { %v688_v8 = vadd.f32 %v686_v7, %v679_v4 }
 0x2cb   : > { %694 = vrot.lane.b32.xlu1 %v688_v8, %s1926_s30 }
 0x2cc   : > { %v642_v12 = vpop.permute.xlu1 %641 }
 0x2cd   : > { %v644_v15 = vmul.f32 %v642_v12, %v2302_v10 }
 0x2cf   : > { %655 = vrot.lane.b32.xlu1 %v640_v11, %s1935_s19 }
 0x2d0   : > { %v859_v14 = vpop.permute.xlu1 %858 }
 0x2d1   : > { %v861_v23 = vmul.f32 %v859_v14, %v2299_v5 }
 0x2d4   : > { %v651_v19 = vpop.permute.xlu1 %650 }
 0x2d5   : > { %v653_v20 = vadd.f32 %v651_v19, %v644_v15 }
 0x2d7   : > { %659 = vrot.lane.b32.xlu1 %v653_v20, %s1926_s30 }
 0x2d8   : > { %v868_v25 = vpop.permute.xlu1 %867 }
 0x2d9   : > { %v870_v28 = vadd.f32 %v868_v25, %v861_v23 }
 0x2db   : > { %872 = vrot.lane.b32.xlu1 %v857_v24, %s1936_s18 }
 0x2dc   : > { %v824_v30 = vpop.permute.xlu1 %823 }
 0x2dd   : > { %v826_v33 = vmul.f32 %v824_v30, %v2302_v10 }
 0x2df   : > { %876 = vrot.lane.b32.xlu1 %v870_v28, %s1937_s11 }
 0x2e0   : > { %v1038_v32 = vpop.permute.xlu1 %1037 }
 0x2e1   : > { %v1040_v36 = vmul.f32 %v1038_v32, %v2299_v5  ;;  %v459_v5 = vlaneseq }
 0x2e3   : > { %837 = vrot.lane.b32.xlu1 %v822_v31, %s1936_s18  ;;  %v2413_v47 = vshrl.u32 %v459_v5, 7  ;;  %v2415_v48 = vand.u32 127, %v459_v5 }
 0x2e4   : > { %v833_v35 = vpop.permute.xlu1 %832 }
 0x2e5   : > { %v835_v37 = vadd.f32 %v833_v35, %v826_v33  ;;  %vm463_vm3 = vcmp.le.s32.totalorder %v2415_v48, %v2413_v47 }
 0x2e7   : > { %841 = vrot.lane.b32.xlu1 %v835_v37, %s1937_s11 }
 0x2e8   : > { %v1047_v39 = vpop.permute.xlu1 %1046 }
 0x2e9   : > { %v1049_v41 = vadd.f32 %v1047_v39, %v1040_v36 }
 0x2eb   : > { %1055 = vrot.lane.b32.xlu1 %v1049_v41, %s1938_s10 }
 0x2ec   : > { %v1003_v43 = vpop.permute.xlu1 %1002 }
 0x2ed   : > { %v1005_v44 = vmul.f32 %v1003_v43, %v2302_v10  ;;  %v1399_v43 = vcombine.low %v2425_v54, %v2425_v54 }
 0x2ef   : > { %1016 = vrot.lane.b32.xlu1 %v1001_v42, %s1939_s21 }
 0x2f0   : > { %v1012_v45 = vpop.permute.xlu1 %1011 }
 0x2f1   : > { %v1014_v46 = vadd.f32 %v1012_v45, %v1005_v44 }
 0x2f3   : > { %1020 = vrot.lane.b32.xlu1 %v1014_v46, %s1938_s10 }
 0x2f4   : > { %v691_v56 = vpop.permute.xlu1 %690 }
 0x32a   : > { %v562_v49 = vpop.f32.mrb[0].mxu0 }
 0x32b   : > { %v568_v10 = vsel %vm463_vm3, %v562_v49, -1e+30  ;;  %v1429_v50 = vpop.f32.mrb[1].mxu0 }
 0x32c   : > { %v565_v51 = vpop.f32.mrb[2].mxu0  ;;  %v569_v52 = vsel %vm521_vm2, %v568_v10, -inf }
 0x32d   : > { %570 = vmax.xlane.f32.xlu0 %v569_v52  ;;  %v1430_v53 = vpop.f32.mrb[3].mxu0 }
 0x33d   : > { %v695_v57 = vpop.permute.xlu1 %694 }
 0x33e   : > { %v697_v2 = vsel %vm490_vm1, %v691_v56, %v695_v57 }
 0x33f   : > { %v699_v4 = vpack.c.bf16 %v697_v2, %v697_v2 }
 0x341   : > { %v656_v58 = vpop.permute.xlu1 %655  ;;  %v704_v8 = vsel %vm521_vm2, %v699_v4, 0 }
 0x343   : > { %1051 = vrot.lane.b32.xlu0 %v1036_v27, %s1939_s21 }
 0x349   : > { %v660_v59 = vpop.permute.xlu1 %659 }
 0x34a   : > { %v662_v12 = vsel %vm490_vm1, %v656_v58, %v660_v59 }
 0x34b   : > { %v698_v15 = vpack.c.bf16 %v662_v12, %v662_v12 }
 0x34d   : > { %v873_v61 = vpop.permute.xlu1 %872 }
 0x351   : > { %v877_v0 = vpop.permute.xlu1 %876 }
 0x352   : > { %v879_v9 = vsel %vm490_vm1, %v873_v61, %v877_v0 }
 0x353   : > { %v881_v13 = vpack.c.bf16 %v879_v9, %v879_v9 }
 0x355   : > { %v838_v1 = vpop.permute.xlu1 %837  ;;  %v886_v18 = vsel %vm521_vm2, %v881_v13, 0 }
 0x359   : > { %v842_v7 = vpop.permute.xlu1 %841 }
 0x35a   : > { %v844_v20 = vsel %vm490_vm1, %v838_v1, %v842_v7 }
 0x35b   : > { %v880_v22 = vpack.c.bf16 %v844_v20, %v844_v20 }
 0x35d   : > { %v1056_v11 = vpop.permute.xlu1 %1055 }
 0x361   : > { %v1017_v19 = vpop.permute.xlu1 %1016 }
 0x365   : > { %v1021_v24 = vpop.permute.xlu1 %1020 }
 0x366   : > { %v1023_v25 = vsel %vm490_vm1, %v1017_v19, %v1021_v24 }
 0x367   : > { %v1059_v26 = vpack.c.bf16 %v1023_v25, %v1023_v25 }
 0x3ba   : > { %v571_v60 = vpop.xlane.xlu0 %570 }
 0x3bb   : > { %v572_v62 = vsub.f32 %v568_v10, %v571_v60 }
 0x3bd   : > { %v573_v63 = vmul.f32 1.442695, %v572_v62 }
 0x3be   : > { %v1052_v14 = vpop.permute.xlu0 %1051 }
 0x3bf   : > { %1602 = vpow2.f32 %v573_v63  ;;  %v1058_v17 = vsel %vm490_vm1, %v1052_v14, %v1056_v11 }
 0x3c0   : > { %v1060_v21 = vpack.c.bf16 %v1058_v17, %v1058_v17 }
 0x3c2   : > { %v1065_v23 = vsel %vm521_vm2, %v1060_v21, 0 }
 0x3c9   : > { %v2432_v6 = vpop.eup %1602 }
 0x3ca   : > { %v578_v3 = vpack.c.bf16 %v2432_v6, %v2432_v6  ;;  %v575_v11 = vsel %vm521_vm2, %v2432_v6, 0.0 }
 0x3cc   : > { %1434 = vmatmul.mubr.msk.bf16.vlgmr.msra.gmra.mrb[0].mxu1 %vm521_vm2, %v578_v3 }
 0x3cd   : > { %1438 = vmatpush3.bf16.xpose.msra.mxu1 %v704_v8  ;;  %1439 = vmatprep.mubr.msk.bf16.mxu1 %vm1928_vm0, %v1927_v16 }
 0x3ce   : > { %1449 = vmatprep.subr.bf16.mxu1 %v1927_v16 }
 0x3d4   : > { %1440 = vmatmul.mubr.msk.bf16.vlgmr.msra.gmra.mrb[4].mxu1 %vm521_vm2, %v698_v15 }
 0x3d5   : > { %1450 = vmatpush3.bf16.xpose.msra.mxu1 %v886_v18  ;;  %1451 = vmatprep.mubr.msk.bf16.mxu1 %vm1928_vm0, %v1927_v16 }
 0x3d6   : > { %1461 = vmatprep.subr.bf16.mxu1 %v1927_v16 }
 0x3dc   : > { %1452 = vmatmul.mubr.msk.bf16.vlgmr.msra.gmra.mrb[8].mxu1 %vm521_vm2, %v880_v22 }
 0x3dd   : > { %1462 = vmatpush3.bf16.xpose.msra.mxu1 %v1065_v23  ;;  %1463 = vmatprep.mubr.msk.bf16.mxu1 %vm1928_vm0, %v1927_v16 }
 0x3e4   : > { %1464 = vmatmul.mubr.msk.bf16.vlgmr.msra.gmra.mrb[12].mxu1 %vm521_vm2, %v1059_v26 }
 0x49f   : > { %v2456_v27 = vpop.f32.mrb[0].mxu1 }
 0x4a0   : > { %v1435_v28 = vpop.f32.mrb[1].mxu1 }
 0x4a1   : > { %v623_v29 = vpop.f32.mrb[2].mxu1 }
 0x4a2   : > { %v1436_v30 = vpop.f32.mrb[3].mxu1 }
 0x4a7   : > { %v740_v31 = vpop.f32.mrb[4].mxu1 }
 0x4a8   : > { %v746_v32 = vsel %vm463_vm3, %v740_v31, -1e+30  ;;  %v1441_v33 = vpop.f32.mrb[5].mxu1 }
 0x4a9   : > { %v743_v34 = vpop.f32.mrb[6].mxu1  ;;  %v747_v35 = vsel %vm521_vm2, %v746_v32, -inf }
 0x4aa   : > { %748 = vmax.xlane.f32.xlu1 %v747_v35  ;;  %v1442_v36 = vpop.f32.mrb[7].mxu1 }
 0x4af   : > { %v922_v37 = vpop.f32.mrb[8].mxu1 }
 0x4b0   : > { %v928_v38 = vsel %vm463_vm3, %v922_v37, -1e+30  ;;  %v1453_v39 = vpop.f32.mrb[9].mxu1 }
 0x4b1   : > { %v929_v40 = vsel %vm521_vm2, %v928_v38, -inf  ;;  %v925_v41 = vpop.f32.mrb[10].mxu1 }
 0x4b2   : > { %930 = vmax.xlane.f32.xlu0 %v929_v40  ;;  %v1454_v42 = vpop.f32.mrb[11].mxu1 }
 0x4b7   : > { %v1101_v44 = vpop.f32.mrb[12].mxu1 }
 0x4b8   : > { %v1465_v45 = vpop.f32.mrb[13].mxu1  ;;  %v1107_v49 = vsel %vm463_vm3, %v1101_v44, -1e+30 }
 0x4b9   : > { %v1104_v46 = vpop.f32.mrb[14].mxu1  ;;  %v1108_v10 = vsel %vm521_vm2, %v1107_v49, -inf }
 0x4ba   : > { %v1466_v5 = vpop.f32.mrb[15].mxu1 }
 0x4bb   : > { %939 = vrot.lane.b32.xlu1 %v1399_v43, %s1936_s18 }
 0x4c8   : > { %760 = vrot.lane.b32.xlu0 %v1399_v43, %s1935_s19 }
 0x4df   : > { %1109 = vmax.xlane.f32.xlu1 %v1108_v10 }
 0x4f0   : > { %1118 = vrot.lane.b32.xlu1 %v1399_v43, %s1939_s21 }
 0x537   : > { %v749_v50 = vpop.xlane.xlu1 %748 }
 0x538   : > { %v750_v51 = vsub.f32 %v746_v32, %v749_v50 }
 0x53a   : > { %v751_v52 = vmul.f32 1.442695, %v750_v51 }
 0x53b   : > { %v940_v47 = vpop.permute.xlu1 %939 }
 0x53c   : > { %1604 = vpow2.f32 %v751_v52  ;;  %v945_v60 = vsel %vm582_vm4, %v940_v47, 0 }
 0x53f   : > { %v931_v53 = vpop.xlane.xlu0 %930 }
 0x540   : > { %v932_v54 = vsub.f32 %v928_v38, %v931_v53 }
 0x542   : > { %v933_v55 = vmul.f32 1.442695, %v932_v54 }
 0x543   : > { %v761_v56 = vpop.permute.xlu0 %760 }
 0x544   : > { %1606 = vpow2.f32 %v933_v55  ;;  %v766_v57 = vsel %vm582_vm4, %v761_v56, 0 }
 0x545   : > { %1444 = vmatpush3.bf16.msra.mxu0 %v766_v57 }
 0x546   : > { %v1605_v58 = vpop.eup %1604  ;;  %1455 = vmatprep.subr.bf16.mxu0 %v1927_v16 }
 0x547   : > { %v753_v48 = vsel %vm521_vm2, %v1605_v58, 0.0  ;;  %v756_v59 = vpack.c.bf16 %v1605_v58, %v1605_v58 }
 0x548   : > { %754 = vadd.xlane.f32.xlu1 %v753_v48 }
 0x549   : > { %1446 = vmatmul.mubr.msk.bf16.vlgmr.msra.gmra.mrb[4].mxu0 %vm521_vm2, %v756_v59 }
 0x54a   : > { %1456 = vmatpush3.bf16.msra.mxu0 %v945_v60  ;;  %1457 = vmatprep.mubr.msk.bf16.mxu0 %vm1928_vm0, %v1927_v16 }
 0x54b   : > { %1467 = vmatprep.subr.bf16.mxu0 %v1927_v16 }
 0x54e   : > { %v1607_v61 = vpop.eup %1606 }
 0x54f   : > { %v935_v62 = vsel %vm521_vm2, %v1607_v61, 0.0  ;;  %v938_v63 = vpack.c.bf16 %v1607_v61, %v1607_v61 }
 0x550   : > { %936 = vadd.xlane.f32.xlu0 %v935_v62 }
 0x551   : > { %1458 = vmatmul.mubr.msk.bf16.vlgmr.msra.gmra.mrb[8].mxu0 %vm521_vm2, %v938_v63 }
 0x552   : > { %1469 = vmatprep.mubr.msk.bf16.mxu0 %vm1928_vm0, %v1927_v16 }
 0x56c   : > { %v1110_v0 = vpop.xlane.xlu1 %1109 }
 0x56d   : > { %v1111_v1 = vsub.f32 %v1107_v49, %v1110_v0 }
 0x56f   : > { %v1112_v2 = vmul.f32 1.442695, %v1111_v1 }
 0x570   : > { %v1119_v4 = vpop.permute.xlu1 %1118 }
 0x571   : > { %1608 = vpow2.f32 %v1112_v2  ;;  %v1124_v3 = vsel %vm582_vm4, %v1119_v4, 0 }
 0x572   : > { %1468 = vmatpush3.bf16.msra.mxu0 %v1124_v3 }
 0x57b   : > { %v1609_v7 = vpop.eup %1608 }
 0x57c   : > { %v1114_v8 = vsel %vm521_vm2, %v1609_v7, 0.0  ;;  %v1117_v9 = vpack.c.bf16 %v1609_v7, %v1609_v7 }
 0x57d   : > { %1115 = vadd.xlane.f32.xlu0 %v1114_v8 }
 0x57e   : > { %1470 = vmatmul.mubr.msk.bf16.vlgmr.msra.gmra.mrb[12].mxu0 %vm521_vm2, %v1117_v9 }
 0x581   : > { %576 = vadd.xlane.f32.xlu0 %v575_v11 }
 0x5d5   : > { %v755_v16 = vpop.xlane.xlu1 %754 }
 0x5d6   : > { %1610 = vrcp.f32 %v755_v16 }
 0x5dd   : > { %v937_v12 = vpop.xlane.xlu0 %936 }
 0x5de   : > { %1612 = vrcp.f32 %v937_v12 }
 0x5e0   : > { %v1611_v13 = vpop.eup %1610 }
 0x5e8   : > { %v1613_v20 = vpop.eup %1612 }
 0x60a   : > { %v1116_v25 = vpop.xlane.xlu0 %1115 }
 0x60b   : > { %1614 = vrcp.f32 %v1116_v25 }
 0x60e   : > { %v577_v33 = vpop.xlane.xlu0 %576 }
 0x60f   : > { %1616 = vrcp.f32 %v577_v33 }
 0x615   : > { %v1615_v26 = vpop.eup %1614 }
 0x619   : > { %v1617_v34 = vpop.eup %1616 }
 0x61a   : > { %v627_v36 = vmul.f32 %v1617_v34, %v2456_v27 }
 0x61c   : > { %v802_v14 = vpop.f32.mrb[4].mxu0 }
 0x61d   : > { %v809_v15 = vmul.f32 %v1611_v13, %v802_v14  ;;  %v1447_v17 = vpop.f32.mrb[5].mxu0 }
 0x61e   : > { %v805_v18 = vpop.f32.mrb[6].mxu0 }
 0x61f   : > { %1169 = vrot.lane.b32.xlu1 %v809_v15, %s1932_s20  ;;  %v1448_v19 = vpop.f32.mrb[7].mxu0 }
 0x624   : > { %v981_v21 = vpop.f32.mrb[8].mxu0 }
 0x625   : > { %v988_v22 = vmul.f32 %v1613_v20, %v981_v21  ;;  %v1459_v23 = vpop.f32.mrb[9].mxu0 }
 0x626   : > { %v984_v24 = vpop.f32.mrb[10].mxu0 }
 0x627   : > { %1173 = vrot.lane.b32.xlu0 %v988_v22, %s1933_s9  ;;  %v1460_v6 = vpop.f32.mrb[11].mxu0 }
 0x651   : > { %v1160_v28 = vpop.f32.mrb[12].mxu0 }
 0x652   : > { %v1167_v29 = vmul.f32 %v1615_v26, %v1160_v28  ;;  %v1471_v30 = vpop.f32.mrb[13].mxu0 }
 0x653   : > { %v1163_v31 = vpop.f32.mrb[14].mxu0 }
 0x654   : > { %1177 = vrot.lane.b32.xlu1 %v1167_v29, %s1934_s1  ;;  %v1472_v32 = vpop.f32.mrb[15].mxu0 }
 0x691   : > { %v1170_v35 = vpop.permute.xlu1 %1169 }
 0x692   : > { %v1180_v38 = vsel %vm521_vm2, %v627_v36, %v1170_v35 }
 0x699   : > { %v1174_v37 = vpop.permute.xlu0 %1173 }
 0x69a   : > { %v1182_v39 = vsel %vm1181_vm5, %v1180_v38, %v1174_v37 }
 0x6c6   : > { %v1178_v40 = vpop.permute.xlu1 %1177 }
 0x6c7   : > { %v1184_v41 = vsel %vm1183_vm6, %v1182_v39, %v1178_v40 }
 0x6c8   : > { %v1185_v42 = vpack.c.bf16 %v1184_v41, %v1184_v41 }
 0x6ca   : > { %1187 = vst.msk [vmem:[%s446_s13] sm:$0xf] %vm1186_vm7, %v1185_v42 }
 0x6cb   : > { %1835 = shalt.err (!%p1832_p7)
}
 0x6cc   : > { %s1836_s0 = scalar_lea.hbm %s2502_s22, 64  ;;  %s1840_s29 = scalar_lea.hbm %s2558_s7, 128 }
 0x6cd   : > { %p1837_p2 = scmp.ne.s32.totalorder %s2502_s22, %s1836_s0  ;;  %p1841_p3 = scmp.lt.u32.totalorder %s2502_s22, %s2558_s7 }
 0x6ce   : > { %p1842_p11 = scmp.lt.u32.totalorder %s1840_s29, %s1836_s0  ;;  %p1844_p13 = scmp.lt.u32.totalorder %s1836_s0, %s2502_s22 }
 0x6cf   : > { %p1838_p1 = pnand %p1837_p2, %p2611_p8 }
 0x6d0   : > { %p1843_p12 = por %p1842_p11, %p1841_p3 }
 0x6d1   : > { %p1839_p9 = pneg %p1838_p1 }
 0x6d2   : > { %p1845_p0 = por %p1844_p13, %p1843_p12 }
 0x6d4   : > { %p1846_p6 = pnand %p1845_p0, %p1839_p9 }
 0x6d6   : > { %1849 = shalt.err (!%p1846_p6)
}
 0x6d7   : > { %1495 = dma.vmem_to_hbm [thread:$0]  (%p2611_p8), %s2504_s5, 64, %s2502_s22, %s1189_s14  }
 0x6d8 PF: > { %s2612_s9 = sld [smem:[#allocation20_spill]]  ;;  %s2613_s1 = sld [smem:[#allocation25_spill]] }
 0x6d9   : > { %s2614_s19 = sld [smem:[#allocation22_spill]] }
 0x6de   : > { %s1216_s18 = sand.u32 1, %s2612_s9   ;;  %p2615_p5 = scmp.ne.s32.totalorder %s2613_s1, 0 }
 0x6df   : > { %p2616_p10 = scmp.ge.s32.totalorder %s2614_s19, 2  ;;  %s1217_s11 = scalar_lea.sflag [#allocation4], %s1216_s18 }
 0x6e1   : > { %p1521_p4 = pnand %p2616_p10, %p2615_p5 }
 0x6e3   : > { %1891 = dma.done.wait (!%p1521_p4), %s1217_s11, 64  }
 0x6e4   : > { %1893 = vsyncadd (!%p1521_p4), %s1217_s11, 4294967232  ;;  %s28_s29 = sadd.s32 1, %s2614_s19   ;;  %s2617_s16 = sld [smem:[#allocation24_spill]] }
 0x6e5   : > { %p25_p7 = scmp.ge.s32.totalorder %s28_s29, 4   ;;  %s2618_s27 = sld [smem:[#allocation21_spill]] }
 0x6e6   : > { %s2619_s28 = sld [smem:[#allocation23_spill]]  ;;  %s2620_s24 = smov %s1900_s25 }
 0x6e7   : > { %s2621_s25 = smov %s1904_s26  ;;  %27 = sbr.rel (!%p25_p7) target bundleno = 15 (0xf), region = 133 }
 0x6ea   : > { %s2622_s26 = smov %s2617_s16 }
 0x6ee   :  { %1222 = vsyncpa [#allocation3], 1 }
 0x6ef   :  { %1224 = vsyncpa [#allocation3 + $0x1], 1 }
 0x6f0   :  { %1225 = vsyncpa [#allocation6], 1 }
 0x6f1   :  { %1227 = vsyncpa [#allocation6 + $0x1], 1 }
 0x6f2   :  { %1228 = vsyncpa [#allocation9], 1 }
 0x6f3   :  { %1229 = vsyncpa [#allocation12], 1 }
 0x6f4   :  { %1230 = vsyncpa [#allocation4], 1 }
 0x6f5   :  { %1232 = vsyncpa [#allocation4 + $0x1], 1 }

// kernel: transformer_block.7
= control target key start
LH: loop header
LB: loop body
LE: loop exit
PB: predicated region body
PF: predicated region fallthrough
CT: control target
= control target key end

     0   :  { %10 = vsyncpa [#allocation5], 0  ;;  %s801_s0 = inlined_call_operand.hbm [shape: f32[16,32], index: 0, kind: input, shape index: {}]   ;;  %s802_s1 = inlined_call_operand.hbm [shape: f32[1,32], index: 1, kind: input, shape index: {}]   ;;  %s803_s2 = inlined_call_operand.hbm [shape: bf16[32,128], index: 2, kind: input, shape index: {}]   ;;  %s804_s3 = inlined_call_operand.hbm [shape: bf16[32,128], index: 3, kind: input, shape index: {}]   ;;  %s805_s4 = inlined_call_operand.hbm [shape: bf16[128,32], index: 4, kind: input, shape index: {}]   ;;  %s806_s5 = inlined_call_operand.hbm [shape: f32[16,32], index: 5, kind: output, shape index: {}]  }
   0x1   :  { %11 = vsyncpa [#allocation8], 0 }
   0x2   :  { %12 = vsyncpa [#allocation11], 0 }
   0x3   :  { %13 = vsyncpa [#allocation6], 0  ;;  %s646_s18 = smov [#allocation7]   ;;  %s506_s22 = scalar_lea.hbm %s802_s1, 16 }
   0x4   :  { %s32_s19 = sshll.u32 %s646_s18, 4  ;;  %p507_p0 = scmp.ne.s32.totalorder %s802_s1, %s506_s22  ;;  %s33_s19 = int_to_ptr.vmem [resolvable:$true] %s32_s19 }
   0x5   :  { %p510_p1 = scmp.lt.u32.totalorder %s506_s22, %s802_s1 }
   0x7   :  { %p512_p2 = pnand %p510_p1, %p507_p0 }
   0x9   :  { %515 = shalt.err (!%p512_p2)
}
   0xa   :  { %s516_s27 = scalar_lea.vmem %s33_s19, 16  ;;  %s520_s28 = scalar_lea.vmem %s33_s19, 32 }
   0xb   :  { %p517_p3 = scmp.ne.s32.totalorder %s33_s19, %s516_s27  ;;  %p521_p4 = scmp.lt.s32.totalorder %s33_s19, %s33_s19 }
   0xc   :  { %p522_p5 = scmp.lt.s32.totalorder %s520_s28, %s516_s27 }
   0xe   :  { %p523_p6 = por %p522_p5, %p521_p4 }
  0x10   :  { %p524_p7 = pnand %p523_p6, %p517_p3 }
  0x12   :  { %527 = shalt.err (!%p524_p7)
}
  0x13   :  { %35 = dma.hbm_to_vmem [thread:$0]  %s802_s1, 16, %s33_s19, [#allocation8]  }
  0x14   :  { %s647_s6 = smov [#allocation10]   ;;  %s648_s8 = smov [#allocation4]  }
  0x15   :  { %s53_s7 = sshll.u32 %s647_s6, 4  ;;  %s19_s9 = sshll.u32 %s648_s8, 4  ;;  %s54_s7 = int_to_ptr.vmem [resolvable:$true] %s53_s7  ;;  %s20_s9 = int_to_ptr.vmem [resolvable:$true] %s19_s9 }
  0x16   :  { %s528_s12 = scalar_lea.hbm %s804_s3, 256 }
  0x17   :  { %p529_p8 = scmp.ne.s32.totalorder %s804_s3, %s528_s12  ;;  %p532_p9 = scmp.lt.u32.totalorder %s528_s12, %s804_s3 }
  0x19   :  { %p534_p10 = pnand %p532_p9, %p529_p8 }
  0x1b   :  { %537 = shalt.err (!%p534_p10)
}
  0x1c   :  { %s538_s1 = scalar_lea.vmem %s54_s7, 256  ;;  %p543_p12 = scmp.lt.s32.totalorder %s54_s7, %s54_s7 }
  0x1d   :  { %p539_p11 = scmp.ne.s32.totalorder %s54_s7, %s538_s1  ;;  %p544_p13 = scmp.lt.s32.totalorder %s538_s1, %s538_s1 }
  0x1f   :  { %p545_p0 = por %p544_p13, %p543_p12 }
  0x21   :  { %p546_p1 = pnand %p545_p0, %p539_p11 }
  0x23   :  { %549 = shalt.err (!%p546_p1)
}
  0x24   :  { %s649_s17 = smov 64   ;;  %s650_s18 = smov 4  }
  0x25   :  { %59 = dma.hbm_to_vmem [thread:$0]  %s804_s3, 256, %s54_s7, [#allocation11], %s649_s17, %s649_s17, %s650_s18  }
  0x26   :  { %s550_s23 = scalar_lea.hbm %s801_s0, 256 }
  0x27   :  { %p551_p2 = scmp.ne.s32.totalorder %s801_s0, %s550_s23  ;;  %p554_p3 = scmp.lt.u32.totalorder %s550_s23, %s801_s0 }
  0x29   :  { %p556_p4 = pnand %p554_p3, %p551_p2 }
  0x2b   :  { %559 = shalt.err (!%p556_p4)
}
  0x2c   :  { %s560_s28 = scalar_lea.vmem %s20_s9, 256  ;;  %p565_p6 = scmp.lt.s32.totalorder %s20_s9, %s20_s9 }
  0x2d   :  { %p561_p5 = scmp.ne.s32.totalorder %s20_s9, %s560_s28  ;;  %p566_p7 = scmp.lt.s32.totalorder %s560_s28, %s560_s28 }
  0x2f   :  { %p567_p8 = por %p566_p7, %p565_p6 }
  0x31   :  { %p568_p9 = pnand %p567_p8, %p561_p5 }
  0x33   :  { %571 = shalt.err (!%p568_p9)
}
  0x34   :  { %s651_s3 = smov 128   ;;  %s652_s29 = smov 8  }
  0x35   :  { %25 = dma.hbm_to_vmem [thread:$0]  %s801_s0, 256, %s20_s9, [#allocation5], %s651_s3, %s651_s3, %s652_s29  }
  0x36   :  { %s653_s7 = smov [#allocation9]   ;;  %s654_s10 = smov [#allocation12]  }
  0x37   :  { %s41_s8 = sshll.u32 %s653_s7, 4  ;;  %s65_s11 = sshll.u32 %s654_s10, 4  ;;  %s42_s8 = int_to_ptr.vmem [resolvable:$true] %s41_s8  ;;  %s66_s11 = int_to_ptr.vmem [resolvable:$true] %s65_s11 }
  0x38   :  { %s572_s14 = scalar_lea.hbm %s803_s2, 256 }
  0x39   :  { %p573_p10 = scmp.ne.s32.totalorder %s803_s2, %s572_s14  ;;  %p576_p11 = scmp.lt.u32.totalorder %s572_s14, %s803_s2 }
  0x3b   :  { %p578_p12 = pnand %p576_p11, %p573_p10 }
  0x3d   :  { %581 = shalt.err (!%p578_p12)
}
  0x3e   :  { %s582_s0 = scalar_lea.vmem %s42_s8, 256  ;;  %p587_p0 = scmp.lt.s32.totalorder %s42_s8, %s42_s8 }
  0x3f   :  { %p583_p13 = scmp.ne.s32.totalorder %s42_s8, %s582_s0  ;;  %p588_p1 = scmp.lt.s32.totalorder %s582_s0, %s582_s0 }
  0x41   :  { %p589_p2 = por %p588_p1, %p587_p0 }
  0x43   :  { %p590_p3 = pnand %p589_p2, %p583_p13 }
  0x45   :  { %593 = shalt.err (!%p590_p3)
}
  0x46   :  { %47 = dma.hbm_to_vmem [thread:$0]  %s803_s2, 256, %s42_s8, [#allocation8], %s649_s17, %s649_s17, %s650_s18  }
  0x47   :  { %s594_s23 = scalar_lea.hbm %s805_s4, 1024 }
  0x48   :  { %p595_p4 = scmp.ne.s32.totalorder %s805_s4, %s594_s23  ;;  %p598_p5 = scmp.lt.u32.totalorder %s594_s23, %s805_s4 }
  0x4a   :  { %p600_p6 = pnand %p598_p5, %p595_p4 }
  0x4c   :  { %603 = shalt.err (!%p600_p6)
}
  0x4d   :  { %s604_s28 = scalar_lea.vmem %s66_s11, 1024  ;;  %p609_p8 = scmp.lt.s32.totalorder %s66_s11, %s66_s11 }
  0x4e   :  { %p605_p7 = scmp.ne.s32.totalorder %s66_s11, %s604_s28  ;;  %p610_p9 = scmp.lt.s32.totalorder %s604_s28, %s604_s28 }
  0x50   :  { %p611_p10 = por %p610_p9, %p609_p8 }
  0x52   :  { %p612_p11 = pnand %p611_p10, %p605_p7 }
  0x54   :  { %615 = shalt.err (!%p612_p11)
}
  0x55   :  { %71 = dma.hbm_to_vmem [thread:$0]  %s805_s4, 1024, %s66_s11, [#allocation11], %s649_s17, %s649_s17, %s650_s18  }
  0x56   :  { %638 = dma.done.wait [#allocation5], 256  }
  0x57   :  { %639 = vsyncadd [#allocation5], 4294967040 }
  0x58   :  { %640 = dma.done.wait [#allocation8], 272  }
  0x59   :  { %641 = vsyncadd [#allocation8], 4294967024 }
  0x5a   :  { %642 = dma.done.wait [#allocation11], 1280  }
  0x5b   :  { %643 = vsyncadd [#allocation11], 4294966016  ;;  %v760_v0 = vld [vmem:[#allocation4] sm:$0xff]  ;;  %vm96_vm0 = vcmask 261120   ;;  %v762_v1 = vld [vmem:[#allocation4 + $0x8] sm:$0xff]  ;;  %v655_v7 = vmov 0.0  }
  0x5c   :  { %v94_v2 = vmul.f32 %v760_v0, %v760_v0  ;;  %v95_v3 = vmul.f32 %v762_v1, %v762_v1  ;;  %v482_v6 = vld [vmem:[#allocation9] sm:$0xff]   ;;  %434 = vmatprep.subr.bf16.mxu1 %v655_v7  ;;  %123 = vst.msk [vmem:[#allocation3] sm:$0xff] %vm96_vm0, %v655_v7  ;;  %124 = vst.msk [vmem:[#allocation3 + $0x8] sm:$0xff] %vm96_vm0, %v655_v7  ;;  %450 = vmatprep.subr.bf16.mxu0 %v655_v7  ;;  %v483_v8 = vld [vmem:[#allocation9 + $0x8] sm:$0xff]   ;;  %vm656_vm1 = vmmov 0   ;;  %s657_s4 = smov [#allocation13]  }
  0x5d   :  { %435 = vmatpush3.bf16.msra.mxu1 %v482_v6  ;;  %438 = vmatprep.mubr.msk.bf16.mxu1 %vm656_vm1, %v655_v7  ;;  %v402_v18 = vld [vmem:[#allocation7] ss:$0 sm:$0xff]  ;;  %v484_v23 = vld [vmem:[#allocation10] sm:$0xff]   ;;  %v486_v26 = vld [vmem:[#allocation12] sm:$0xff]   ;;  %s388_s17 = sshll.u32 %s657_s4, 4  ;;  %s389_s17 = int_to_ptr.vmem [resolvable:$true] %s388_s17 }
  0x5e   :  { %v97_v4 = vsel %vm96_vm0, %v94_v2, 0.0  ;;  %v100_v5 = vsel %vm96_vm0, %v95_v3, 0.0  ;;  %436 = vmatprep.subr.bf16.mxu1 %v655_v7  ;;  %466 = vmatprep.mubr.msk.bf16.mxu0 %vm656_vm1, %v655_v7  ;;  %v485_v25 = vld [vmem:[#allocation10 + $0x8] sm:$0xff]   ;;  %v487_v27 = vld [vmem:[#allocation12 + $0x8] sm:$0xff]   ;;  %v488_v28 = vld [vmem:[#allocation12 + $0x10] sm:$0xff]   ;;  %s616_s18 = scalar_lea.vmem %s389_s17, 256  ;;  %p621_p13 = scmp.lt.s32.totalorder %s389_s17, %s389_s17 }
  0x5f   :  { %98 = vadd.xlane.f32.xlu0 %v97_v4  ;;  %451 = vmatpush3.bf16.msra.mxu0 %v486_v26  ;;  %v489_v29 = vld [vmem:[#allocation12 + $0x18] sm:$0xff]   ;;  %v490_v30 = vld [vmem:[#allocation12 + $0x20] sm:$0xff]   ;;  %v491_v31 = vld [vmem:[#allocation12 + $0x28] sm:$0xff]   ;;  %p617_p12 = scmp.ne.s32.totalorder %s389_s17, %s616_s18  ;;  %p622_p0 = scmp.lt.s32.totalorder %s616_s18, %s616_s18 }
  0x60   :  { %452 = vmatprep.subr.bf16.mxu0 %v655_v7  ;;  %v492_v32 = vld [vmem:[#allocation12 + $0x30] sm:$0xff]   ;;  %v493_v33 = vld [vmem:[#allocation12 + $0x38] sm:$0xff]  }
  0x61   :  { %437 = vmatpush3.bf16.msra.mxu1 %v483_v8  ;;  %p623_p1 = por %p622_p0, %p621_p13 }
  0x62   :  { %442 = vmatprep.subr.bf16.mxu1 %v655_v7 }
  0x63   :  { %101 = vadd.xlane.f32.xlu0 %v100_v5  ;;  %453 = vmatpush3.bf16.msra.mxu0 %v487_v27  ;;  %v260_v55 = vld [vmem:[#allocation3] sm:$0xff]  ;;  %v261_v57 = vld [vmem:[#allocation3 + $0x8] sm:$0xff]  ;;  %p624_p2 = pnand %p623_p1, %p617_p12 }
  0x64   :  { %454 = vmatprep.subr.bf16.mxu0 %v655_v7 }
  0x67   :  { %455 = vmatpush3.bf16.msra.mxu0 %v488_v28 }
  0x68   :  { %456 = vmatprep.subr.bf16.mxu0 %v655_v7 }
  0x6b   :  { %457 = vmatpush3.bf16.msra.mxu0 %v489_v29 }
  0x6c   :  { %458 = vmatprep.subr.bf16.mxu0 %v655_v7 }
  0x6f   :  { %459 = vmatpush3.bf16.msra.mxu0 %v490_v30 }
  0x70   :  { %460 = vmatprep.subr.bf16.mxu0 %v655_v7 }
  0x73   :  { %461 = vmatpush3.bf16.msra.mxu0 %v491_v31 }
  0x74   :  { %462 = vmatprep.subr.bf16.mxu0 %v655_v7 }
  0x77   :  { %463 = vmatpush3.bf16.msra.mxu0 %v492_v32 }
  0x78   :  { %464 = vmatprep.subr.bf16.mxu0 %v655_v7 }
  0x7b   :  { %465 = vmatpush3.bf16.msra.mxu0 %v493_v33 }
  0xec   :  { %v99_v9 = vpop.xlane.xlu0 %98 }
  0xed   :  { %v104_v10 = vmul.f32 0.03125, %v99_v9 }
  0xef   :  { %v106_v11 = vadd.f32 1e-05, %v104_v10 }
  0xf0   :  { %v102_v12 = vpop.xlane.xlu0 %101 }
  0xf1   :  { %494 = vrsqrt.f32 %v106_v11  ;;  %v105_v13 = vmul.f32 0.03125, %v102_v12 }
  0xf3   :  { %v107_v14 = vadd.f32 1e-05, %v105_v13 }
  0xf5   :  { %496 = vrsqrt.f32 %v107_v14 }
  0xfb   :  { %v495_v15 = vpop.eup %494 }
  0xfc   :  { %v110_v16 = vmul.f32 %v495_v15, %v760_v0 }
  0xfe   :  { %v119_v20 = vmul.f32 %v402_v18, %v110_v16 }
  0xff   :  { %v497_v17 = vpop.eup %496 }
 0x100   :  { %v111_v19 = vmul.f32 %v497_v17, %v762_v1 }
 0x102   :  { %v120_v21 = vmul.f32 %v402_v18, %v111_v19 }
 0x104   :  { %v121_v22 = vpack.c.bf16 %v120_v21, %v119_v20 }
 0x106   :  { %122 = vst.msk [vmem:[#allocation2] sm:$0xff] %vm96_vm0, %v121_v22 }
 0x10d   :  { %v125_v24 = vld [vmem:[#allocation2] sm:$0xff] }
 0x10e   :  { %439 = vmatmul.mubr.msk.bf16.vlgmr.msra.gmra.mrb[0].mxu1 %vm96_vm0, %v125_v24 }
 0x10f   :  { %443 = vmatpush3.bf16.msra.mxu1 %v484_v23  ;;  %446 = vmatprep.mubr.msk.bf16.mxu1 %vm656_vm1, %v655_v7 }
 0x110   :  { %444 = vmatprep.subr.bf16.mxu1 %v655_v7 }
 0x113   :  { %445 = vmatpush3.bf16.msra.mxu1 %v485_v25 }
 0x116   :  { %447 = vmatmul.mubr.msk.bf16.vlgmr.msra.gmra.mrb[4].mxu1 %vm96_vm0, %v125_v24 }
 0x1e1   :  { %v180_v34 = vpop.f32.mrb[0].mxu1 }
 0x1e2   :  { %v409_v35 = vmul.f32 -1.442695, %v180_v34  ;;  %v440_v36 = vpop.f32.mrb[1].mxu1 }
 0x1e3   :  { %v183_v37 = vpop.f32.mrb[2].mxu1 }
 0x1e4   :  { %498 = vpow2.f32 %v409_v35  ;;  %v410_v38 = vmul.f32 -1.442695, %v183_v37  ;;  %v441_v39 = vpop.f32.mrb[3].mxu1 }
 0x1e6   :  { %500 = vpow2.f32 %v410_v38 }
 0x1e9   :  { %v237_v40 = vpop.f32.mrb[4].mxu1 }
 0x1ea   :  { %v448_v41 = vpop.f32.mrb[5].mxu1 }
 0x1eb   :  { %v240_v42 = vpop.f32.mrb[6].mxu1 }
 0x1ec   :  { %v449_v43 = vpop.f32.mrb[7].mxu1 }
 0x1ee   :  { %v499_v44 = vpop.eup %498 }
 0x1ef   :  { %v250_v45 = vadd.f32 1.0, %v499_v44 }
 0x1f0   :  { %v501_v46 = vpop.eup %500 }
 0x1f1   :  { %502 = vrcp.f32 %v250_v45  ;;  %v251_v47 = vadd.f32 1.0, %v501_v46 }
 0x1f3   :  { %504 = vrcp.f32 %v251_v47 }
 0x1fb   :  { %v503_v48 = vpop.eup %502 }
 0x1fc   :  { %v256_v49 = vmul.f32 %v503_v48, %v180_v34 }
 0x1fd   :  { %v505_v50 = vpop.eup %504 }
 0x1fe   :  { %v257_v51 = vmul.f32 %v505_v50, %v183_v37  ;;  %v258_v52 = vmul.f32 %v256_v49, %v237_v40 }
 0x200   :  { %v259_v53 = vmul.f32 %v257_v51, %v240_v42 }
 0x202   :  { %v262_v54 = vpack.c.bf16 %v259_v53, %v258_v52 }
 0x204   :  { %467 = vmatmul.mubr.bf16.vlgmr.msra.gmra.mrb[0].mxu0 %v262_v54 }
 0x2d7   :  { %v361_v56 = vpop.f32.mrb[0].mxu0 }
 0x2d8   :  { %v368_v58 = vadd.f32 %v361_v56, %v260_v55  ;;  %v468_v59 = vpop.f32.mrb[1].mxu0 }
 0x2d9   :  { %v364_v60 = vpop.f32.mrb[2].mxu0 }
 0x2da   :  { %370 = vst.msk [vmem:[#allocation3] sm:$0xff] %vm96_vm0, %v368_v58  ;;  %v369_v61 = vadd.f32 %v364_v60, %v261_v57  ;;  %v469_v62 = vpop.f32.mrb[3].mxu0 }
 0x2dc   :  { %371 = vst.msk [vmem:[#allocation3 + $0x8] sm:$0xff] %vm96_vm0, %v369_v61 }
 0x2e1   :  { %v377_v63 = vld [vmem:[#allocation3] sm:$0xff] }
 0x2e2   :  { %v379_v2 = vadd.f32 %v377_v63, %v760_v0 }
 0x2e3   :  { %v378_v3 = vld [vmem:[#allocation3 + $0x8] sm:$0xff] }
 0x2e4   :  { %v380_v4 = vadd.f32 %v378_v3, %v762_v1  ;;  %381 = vst.msk [vmem:[#allocation13] sm:$0xff] %vm96_vm0, %v379_v2 }
 0x2e6   :  { %382 = vst.msk [vmem:[#allocation13 + $0x8] sm:$0xff] %vm96_vm0, %v380_v4 }
 0x2e7   :  { %627 = shalt.err (!%p624_p2)
}
 0x2e8   :  { %s628_s8 = scalar_lea.hbm %s806_s5, 256 }
 0x2e9   :  { %p629_p3 = scmp.ne.s32.totalorder %s806_s5, %s628_s8  ;;  %p632_p4 = scmp.lt.u32.totalorder %s628_s8, %s806_s5 }
 0x2eb   :  { %p634_p5 = pnand %p632_p4, %p629_p3 }
 0x2ed   :  { %637 = shalt.err (!%p634_p5)
}
 0x2ee   :  { %394 = dma.vmem_to_hbm [thread:$0]  %s389_s17, 256, %s806_s5, [#allocation6], %s651_s3, %s651_s3, %s652_s29  }
 0x2ef   :  { %644 = dma.done.wait [#allocation6], 256  }
 0x2f0   :  { %645 = vsyncadd [#allocation6], 4294967040 }
 0x2f1   :  { %398 = vsyncpa [#allocation5], 1 }
 0x2f2   :  { %399 = vsyncpa [#allocation8], 1 }
 0x2f3   :  { %400 = vsyncpa [#allocation11], 1 }
 0x2f4   :  { %401 = vsyncpa [#allocation6], 1 }

</bundles_post_ra>
